<compile_context>
chip_gen: v7x
topology: tpu7x:2x2x1
jax: 0.10.0
libtpu: 0.0.40
codegen_flags: <defaults>
</compile_context>

<pallas_src>
import jax
import jax.numpy as jnp
from jax import lax
from jax.experimental import pallas as pl
from jax.experimental.pallas import tpu as pltpu

VOCAB = 10
HID = 12
LANE = 128    # lane-aligned per-gate width
B_TILE = 8    # sublane-aligned batch tile


def encoder_gru_kernel(ids_ref, eproj_ref, whh_ref, bhn_ref, out_ref, hn_ref):
    BP, HP = hn_ref.shape            # (8, 128)
    T = out_ref.shape[0] // BP       # time steps in this batch tile

    # Hoisted once (no per-step iota rebuild / bias broadcast inside the loop).
    lane_iota = lax.broadcasted_iota(jnp.int32, (BP, HP), 1)   # (8, 128)
    bhn = bhn_ref[...]                                         # (8, 128) n-gate b_hh, replicated rows

    def step(t, h):
        row = pl.multiple_of(t * BP, BP)                       # 8-sublane aligned
        # ---- h-independent input path: one-hot -> (emb @ W_ih.T + biases) -----
        ids_t = ids_ref[pl.ds(row, BP), :]                     # (8, 128) int32, full tile
        onehot = (ids_t == lane_iota).astype(jnp.float32)      # (8, 128), unmasked compare
        gi = jnp.dot(onehot, eproj_ref[...],
                     preferred_element_type=jnp.float32)       # (8, 3*128)
        # ---- recurrent path -----------------------------------------------------
        gh = jnp.dot(h, whh_ref[...],
                     preferred_element_type=jnp.float32)       # (8, 3*128)
        r = jax.nn.sigmoid(gi[:, 0:HP] + gh[:, 0:HP])
        z = jax.nn.sigmoid(gi[:, HP:2 * HP] + gh[:, HP:2 * HP])
        n = jnp.tanh(gi[:, 2 * HP:3 * HP] + r * (gh[:, 2 * HP:3 * HP] + bhn))
        h_new = (1.0 - z) * n + z * h                          # padding lanes stay 0
        out_ref[pl.ds(row, BP), :] = h_new                     # full-tile unmasked store
        return h_new

    h0 = jnp.zeros((BP, HP), dtype=jnp.float32)
    hn_ref[...] = lax.fori_loop(0, T, step, h0, unroll=True)


def encoder_forward(x_ids, params):
    """x_ids: int32 (B, T) token indices in [0, 10). Returns (output, h_n)
    matching PyTorch: output (B, T, 12) float32, h_n (1, B, 12) float32."""
    B, T = x_ids.shape
    H, HP, BT = HID, LANE, B_TILE
    nb = -(-B // BT)          # number of 8-row batch tiles
    BP = nb * BT

    emb = params["emb"]
    w_ih, w_hh = params["w_ih"], params["w_hh"]    # (3H, H), gate order [r|z|n]
    b_ih, b_hh = params["b_ih"], params["b_hh"]    # (3H,)

    # Fold embedding + input projection + b_ih (+ b_hh for r/z gates) into one
    # lane-aligned (128, 3*128) table; zero everywhere else (keeps padding lanes 0).
    gi_all = emb @ w_ih.T + b_ih[None, :]                        # (V, 3H)
    gi_all = gi_all.at[:, :2 * H].add(b_hh[None, :2 * H])        # fold b_hh_r, b_hh_z
    eproj = jnp.zeros((LANE, 3 * HP), jnp.float32)
    whh_all = jnp.zeros((HP, 3 * HP), jnp.float32)
    for g in range(3):
        eproj = eproj.at[:VOCAB, g * HP:g * HP + H].set(gi_all[:, g * H:(g + 1) * H])
        whh_all = whh_all.at[:H, g * HP:g * HP + H].set(w_hh[g * H:(g + 1) * H, :].T)
    # n-gate recurrent bias only, replicated across 8 sublanes (no in-kernel broadcast).
    bhn = jnp.zeros((BT, HP), jnp.float32).at[:, :H].set(
        jnp.broadcast_to(b_hh[None, 2 * H:3 * H], (BT, H)))

    # ids laid out (batch-tile, time, row-in-tile), pre-broadcast across 128 lanes
    # so every per-step load is a full (8,128) tile. Padded rows use id 0 (sliced off).
    ids_p = jnp.zeros((BP, T), jnp.int32).at[:B, :].set(x_ids.astype(jnp.int32))
    ids_rows = ids_p.reshape(nb, BT, T).transpose(0, 2, 1).reshape(nb * T * BT, 1)
    ids_bcast = jnp.broadcast_to(ids_rows, (nb * T * BT, LANE))

    out_flat, h_n = pl.pallas_call(
        encoder_gru_kernel,
        grid=(nb,),
        out_shape=(jax.ShapeDtypeStruct((nb * T * BT, HP), jnp.float32),
                   jax.ShapeDtypeStruct((BP, HP), jnp.float32)),
        in_specs=[
            pl.BlockSpec((T * BT, LANE), lambda i: (i, 0)),      # ids for this batch tile
            pl.BlockSpec((LANE, 3 * HP), lambda i: (0, 0)),      # eproj (shared)
            pl.BlockSpec((HP, 3 * HP), lambda i: (0, 0)),        # W_hh (shared)
            pl.BlockSpec((BT, HP), lambda i: (0, 0)),            # n-gate b_hh (shared)
        ],
        out_specs=(
            pl.BlockSpec((T * BT, HP), lambda i: (i, 0)),
            pl.BlockSpec((BT, HP), lambda i: (i, 0)),
        ),
        compiler_params=pltpu.CompilerParams(
            dimension_semantics=("parallel",)),                  # megacore on v7x for larger B
    )(ids_bcast, eproj, whh_all, bhn)

    out = out_flat.reshape(nb, T, BT, HP)[:, :, :, :H]           # (nb, T, 8, H)
    out = out.transpose(0, 2, 1, 3).reshape(BP, T, H)[:B]        # (B, T, H)
    return out, h_n[:B, :H][None]                                # (1, B, H)


def make_params(key):
    k = 1.0 / jnp.sqrt(jnp.float32(HID))
    ks = jax.random.split(key, 5)
    return {
        "emb": jax.random.normal(ks[0], (VOCAB, HID), jnp.float32),
        "w_ih": jax.random.uniform(ks[1], (3 * HID, HID), jnp.float32, -k, k),
        "w_hh": jax.random.uniform(ks[2], (3 * HID, HID), jnp.float32, -k, k),
        "b_ih": jax.random.uniform(ks[3], (3 * HID,), jnp.float32, -k, k),
        "b_hh": jax.random.uniform(ks[4], (3 * HID,), jnp.float32, -k, k),
    }


def encoder_reference(x_ids, params):
    """Pure-JAX reference replicating torch.nn.GRU semantics (check only)."""
    H = HID
    x = params["emb"][x_ids]                                     # (B, T, H)
    w_ih, w_hh = params["w_ih"], params["w_hh"]
    b_ih, b_hh = params["b_ih"], params["b_hh"]
    B, T, _ = x.shape
    h = jnp.zeros((B, H), jnp.float32)

    def step(h, x_t):
        gi = x_t @ w_ih.T + b_ih
        gh = h @ w_hh.T + b_hh
        r = jax.nn.sigmoid(gi[:, :H] + gh[:, :H])
        z = jax.nn.sigmoid(gi[:, H:2 * H] + gh[:, H:2 * H])
        n = jnp.tanh(gi[:, 2 * H:] + r * gh[:, 2 * H:])
        h_new = (1.0 - z) * n + z * h
        return h_new, h_new

    h_last, outs = lax.scan(step, h, x.transpose(1, 0, 2))       # outs: (T, B, H)
    return outs.transpose(1, 0, 2), h_last[None]


if __name__ == "__main__":
    key = jax.random.PRNGKey(0)
    kp, kx = jax.random.split(key)
    params = make_params(kp)

    B, T = 2, 8
    x = jax.random.randint(kx, (B, T), 0, VOCAB, dtype=jnp.int32)

    output, h_n = encoder_forward(x, params)
    output, h_n = jax.block_until_ready((output, h_n))

    ref_out, ref_hn = encoder_reference(x, params)
    assert output.shape == (B, T, HID) and h_n.shape == (1, B, HID)
    assert jnp.allclose(output, ref_out, atol=2e-5, rtol=2e-5)
    assert jnp.allclose(h_n, ref_hn, atol=2e-5, rtol=2e-5)

    print("KERNEL_OK")
</pallas_src>

<mosaic_0001>
module attributes {stable_mosaic.version = 11 : i64} {
  func.func @encoder_gru_kernel(%arg0: i32, %arg1: memref<64x128xi32, #tpu.memory_space<vmem>>, %arg2: memref<128x384xf32, #tpu.memory_space<vmem>>, %arg3: memref<128x384xf32, #tpu.memory_space<vmem>>, %arg4: memref<8x128xf32, #tpu.memory_space<vmem>>, %arg5: memref<64x128xf32, #tpu.memory_space<vmem>>, %arg6: memref<8x128xf32, #tpu.memory_space<vmem>>) attributes {dimension_semantics = [#tpu.dimension_semantics<parallel>], iteration_bounds = array<i64: 1>, scalar_prefetch = 0 : i64, scratch_operands = 0 : i64, tpu.core_type = #tpu.core_type<tc>, window_params = [{transform_indices = @transform_0, window_bounds = array<i64: 64, 128>}, {pipeline_mode = #tpu.pipeline_mode<synchronous>, transform_indices = @transform_1, window_bounds = array<i64: 128, 384>}, {pipeline_mode = #tpu.pipeline_mode<synchronous>, transform_indices = @transform_2, window_bounds = array<i64: 128, 384>}, {pipeline_mode = #tpu.pipeline_mode<synchronous>, transform_indices = @transform_3, window_bounds = array<i64: 8, 128>}, {transform_indices = @transform_4, window_bounds = array<i64: 64, 128>}, {transform_indices = @transform_5, window_bounds = array<i64: 8, 128>}]} {
    %0 = tpu.iota {dimensions = array<i32: 1>} : vector<8x128xi32>
    %c0 = arith.constant 0 : index
    %c0_0 = arith.constant 0 : index
    %1 = vector.load %arg4[%c0, %c0_0] : memref<8x128xf32, #tpu.memory_space<vmem>>, vector<8x128xf32>
    %cst = arith.constant 0.000000e+00 : f32
    %2 = vector.broadcast %cst : f32 to vector<8x128xf32>
    %c0_i32 = arith.constant 0 : i32
    %c8_i32 = arith.constant 8 : i32
    %3 = arith.muli %c0_i32, %c8_i32 : i32
    %4 = tpu.assume_multiple %3, 8 : i32
    %5 = arith.index_cast %4 : i32 to index
    %c0_1 = arith.constant 0 : index
    %6 = vector.load %arg1[%5, %c0_1] : memref<64x128xi32, #tpu.memory_space<vmem>>, vector<8x128xi32>
    %7 = arith.cmpi eq, %6, %0 : vector<8x128xi32>
    %8 = arith.extui %7 : vector<8x128xi1> to vector<8x128xi32>
    %9 = arith.sitofp %8 : vector<8x128xi32> to vector<8x128xf32>
    %c0_2 = arith.constant 0 : index
    %c0_3 = arith.constant 0 : index
    %10 = vector.load %arg2[%c0_2, %c0_3] : memref<128x384xf32, #tpu.memory_space<vmem>>, vector<128x384xf32>
    %cst_4 = arith.constant dense<0.000000e+00> : vector<8x384xf32>
    %11 = tpu.matmul %9, %10, %cst_4 {dimension_numbers = #tpu.dot_dimension_numbers<[1], [0], [0], [1], [0, 0, 1, 1], [], []>} : vector<8x128xf32>, vector<128x384xf32>, vector<8x384xf32> -> vector<8x384xf32>
    %c0_5 = arith.constant 0 : index
    %c0_6 = arith.constant 0 : index
    %12 = vector.load %arg3[%c0_5, %c0_6] : memref<128x384xf32, #tpu.memory_space<vmem>>, vector<128x384xf32>
    %cst_7 = arith.constant dense<0.000000e+00> : vector<8x384xf32>
    %13 = tpu.matmul %2, %12, %cst_7 {dimension_numbers = #tpu.dot_dimension_numbers<[1], [0], [0], [1], [0, 0, 1, 1], [], []>} : vector<8x128xf32>, vector<128x384xf32>, vector<8x384xf32> -> vector<8x384xf32>
    %14 = vector.extract_strided_slice %11 {offsets = [0, 0], sizes = [8, 128], strides = [1, 1]} : vector<8x384xf32> to vector<8x128xf32>
    %15 = vector.extract_strided_slice %13 {offsets = [0, 0], sizes = [8, 128], strides = [1, 1]} : vector<8x384xf32> to vector<8x128xf32>
    %16 = arith.addf %14, %15 : vector<8x128xf32>
    %17 = arith.negf %16 : vector<8x128xf32>
    %18 = math.exp %17 : vector<8x128xf32>
    %cst_8 = arith.constant 1.000000e+00 : f32
    %19 = vector.broadcast %cst_8 : f32 to vector<8x128xf32>
    %20 = arith.addf %19, %18 : vector<8x128xf32>
    %21 = arith.divf %19, %20 : vector<8x128xf32>
    %22 = vector.extract_strided_slice %11 {offsets = [0, 128], sizes = [8, 128], strides = [1, 1]} : vector<8x384xf32> to vector<8x128xf32>
    %23 = vector.extract_strided_slice %13 {offsets = [0, 128], sizes = [8, 128], strides = [1, 1]} : vector<8x384xf32> to vector<8x128xf32>
    %24 = arith.addf %22, %23 : vector<8x128xf32>
    %25 = arith.negf %24 : vector<8x128xf32>
    %26 = math.exp %25 : vector<8x128xf32>
    %cst_9 = arith.constant 1.000000e+00 : f32
    %27 = vector.broadcast %cst_9 : f32 to vector<8x128xf32>
    %28 = arith.addf %27, %26 : vector<8x128xf32>
    %29 = arith.divf %27, %28 : vector<8x128xf32>
    %30 = vector.extract_strided_slice %11 {offsets = [0, 256], sizes = [8, 128], strides = [1, 1]} : vector<8x384xf32> to vector<8x128xf32>
    %31 = vector.extract_strided_slice %13 {offsets = [0, 256], sizes = [8, 128], strides = [1, 1]} : vector<8x384xf32> to vector<8x128xf32>
    %32 = arith.addf %31, %1 : vector<8x128xf32>
    %33 = arith.mulf %21, %32 : vector<8x128xf32>
    %34 = arith.addf %30, %33 : vector<8x128xf32>
    %35 = math.tanh %34 : vector<8x128xf32>
    %cst_10 = arith.constant 1.000000e+00 : f32
    %36 = vector.broadcast %cst_10 : f32 to vector<8x128xf32>
    %37 = arith.subf %36, %29 : vector<8x128xf32>
    %38 = arith.mulf %37, %35 : vector<8x128xf32>
    %39 = arith.mulf %29, %2 : vector<8x128xf32>
    %40 = arith.addf %38, %39 : vector<8x128xf32>
    %41 = arith.index_cast %4 : i32 to index
    %c0_11 = arith.constant 0 : index
    %42 = vector.load %arg5[%41, %c0_11] : memref<64x128xf32, #tpu.memory_space<vmem>>, vector<8x128xf32>
    tpu.vector_store %arg5[%41, %c0_11], %40 {strides = array<i32>} : memref<64x128xf32, #tpu.memory_space<vmem>>, vector<8x128xf32>,
    %c1_i32 = arith.constant 1 : i32
    %c8_i32_12 = arith.constant 8 : i32
    %43 = arith.muli %c1_i32, %c8_i32_12 : i32
    %44 = tpu.assume_multiple %43, 8 : i32
    %45 = arith.index_cast %44 : i32 to index
    %c0_13 = arith.constant 0 : index
    %46 = vector.load %arg1[%45, %c0_13] : memref<64x128xi32, #tpu.memory_space<vmem>>, vector<8x128xi32>
    %47 = arith.cmpi eq, %46, %0 : vector<8x128xi32>
    %48 = arith.extui %47 : vector<8x128xi1> to vector<8x128xi32>
    %49 = arith.sitofp %48 : vector<8x128xi32> to vector<8x128xf32>
    %c0_14 = arith.constant 0 : index
    %c0_15 = arith.constant 0 : index
    %50 = vector.load %arg2[%c0_14, %c0_15] : memref<128x384xf32, #tpu.memory_space<vmem>>, vector<128x384xf32>
    %cst_16 = arith.constant dense<0.000000e+00> : vector<8x384xf32>
    %51 = tpu.matmul %49, %50, %cst_16 {dimension_numbers = #tpu.dot_dimension_numbers<[1], [0], [0], [1], [0, 0, 1, 1], [], []>} : vector<8x128xf32>, vector<128x384xf32>, vector<8x384xf32> -> vector<8x384xf32>
    %c0_17 = arith.constant 0 : index
    %c0_18 = arith.constant 0 : index
    %52 = vector.load %arg3[%c0_17, %c0_18] : memref<128x384xf32, #tpu.memory_space<vmem>>, vector<128x384xf32>
    %cst_19 = arith.constant dense<0.000000e+00> : vector<8x384xf32>
    %53 = tpu.matmul %40, %52, %cst_19 {dimension_numbers = #tpu.dot_dimension_numbers<[1], [0], [0], [1], [0, 0, 1, 1], [], []>} : vector<8x128xf32>, vector<128x384xf32>, vector<8x384xf32> -> vector<8x384xf32>
    %54 = vector.extract_strided_slice %51 {offsets = [0, 0], sizes = [8, 128], strides = [1, 1]} : vector<8x384xf32> to vector<8x128xf32>
    %55 = vector.extract_strided_slice %53 {offsets = [0, 0], sizes = [8, 128], strides = [1, 1]} : vector<8x384xf32> to vector<8x128xf32>
    %56 = arith.addf %54, %55 : vector<8x128xf32>
    %57 = arith.negf %56 : vector<8x128xf32>
    %58 = math.exp %57 : vector<8x128xf32>
    %cst_20 = arith.constant 1.000000e+00 : f32
    %59 = vector.broadcast %cst_20 : f32 to vector<8x128xf32>
    %60 = arith.addf %59, %58 : vector<8x128xf32>
    %61 = arith.divf %59, %60 : vector<8x128xf32>
    %62 = vector.extract_strided_slice %51 {offsets = [0, 128], sizes = [8, 128], strides = [1, 1]} : vector<8x384xf32> to vector<8x128xf32>
    %63 = vector.extract_strided_slice %53 {offsets = [0, 128], sizes = [8, 128], strides = [1, 1]} : vector<8x384xf32> to vector<8x128xf32>
    %64 = arith.addf %62, %63 : vector<8x128xf32>
    %65 = arith.negf %64 : vector<8x128xf32>
    %66 = math.exp %65 : vector<8x128xf32>
    %cst_21 = arith.constant 1.000000e+00 : f32
    %67 = vector.broadcast %cst_21 : f32 to vector<8x128xf32>
    %68 = arith.addf %67, %66 : vector<8x128xf32>
    %69 = arith.divf %67, %68 : vector<8x128xf32>
    %70 = vector.extract_strided_slice %51 {offsets = [0, 256], sizes = [8, 128], strides = [1, 1]} : vector<8x384xf32> to vector<8x128xf32>
    %71 = vector.extract_strided_slice %53 {offsets = [0, 256], sizes = [8, 128], strides = [1, 1]} : vector<8x384xf32> to vector<8x128xf32>
    %72 = arith.addf %71, %1 : vector<8x128xf32>
    %73 = arith.mulf %61, %72 : vector<8x128xf32>
    %74 = arith.addf %70, %73 : vector<8x128xf32>
    %75 = math.tanh %74 : vector<8x128xf32>
    %cst_22 = arith.constant 1.000000e+00 : f32
    %76 = vector.broadcast %cst_22 : f32 to vector<8x128xf32>
    %77 = arith.subf %76, %69 : vector<8x128xf32>
    %78 = arith.mulf %77, %75 : vector<8x128xf32>
    %79 = arith.mulf %69, %40 : vector<8x128xf32>
    %80 = arith.addf %78, %79 : vector<8x128xf32>
    %81 = arith.index_cast %44 : i32 to index
    %c0_23 = arith.constant 0 : index
    %82 = vector.load %arg5[%81, %c0_23] : memref<64x128xf32, #tpu.memory_space<vmem>>, vector<8x128xf32>
    tpu.vector_store %arg5[%81, %c0_23], %80 {strides = array<i32>} : memref<64x128xf32, #tpu.memory_space<vmem>>, vector<8x128xf32>,
    %c2_i32 = arith.constant 2 : i32
    %c8_i32_24 = arith.constant 8 : i32
    %83 = arith.muli %c2_i32, %c8_i32_24 : i32
    %84 = tpu.assume_multiple %83, 8 : i32
    %85 = arith.index_cast %84 : i32 to index
    %c0_25 = arith.constant 0 : index
    %86 = vector.load %arg1[%85, %c0_25] : memref<64x128xi32, #tpu.memory_space<vmem>>, vector<8x128xi32>
    %87 = arith.cmpi eq, %86, %0 : vector<8x128xi32>
    %88 = arith.extui %87 : vector<8x128xi1> to vector<8x128xi32>
    %89 = arith.sitofp %88 : vector<8x128xi32> to vector<8x128xf32>
    %c0_26 = arith.constant 0 : index
    %c0_27 = arith.constant 0 : index
    %90 = vector.load %arg2[%c0_26, %c0_27] : memref<128x384xf32, #tpu.memory_space<vmem>>, vector<128x384xf32>
    %cst_28 = arith.constant dense<0.000000e+00> : vector<8x384xf32>
    %91 = tpu.matmul %89, %90, %cst_28 {dimension_numbers = #tpu.dot_dimension_numbers<[1], [0], [0], [1], [0, 0, 1, 1], [], []>} : vector<8x128xf32>, vector<128x384xf32>, vector<8x384xf32> -> vector<8x384xf32>
    %c0_29 = arith.constant 0 : index
    %c0_30 = arith.constant 0 : index
    %92 = vector.load %arg3[%c0_29, %c0_30] : memref<128x384xf32, #tpu.memory_space<vmem>>, vector<128x384xf32>
    %cst_31 = arith.constant dense<0.000000e+00> : vector<8x384xf32>
    %93 = tpu.matmul %80, %92, %cst_31 {dimension_numbers = #tpu.dot_dimension_numbers<[1], [0], [0], [1], [0, 0, 1, 1], [], []>} : vector<8x128xf32>, vector<128x384xf32>, vector<8x384xf32> -> vector<8x384xf32>
    %94 = vector.extract_strided_slice %91 {offsets = [0, 0], sizes = [8, 128], strides = [1, 1]} : vector<8x384xf32> to vector<8x128xf32>
    %95 = vector.extract_strided_slice %93 {offsets = [0, 0], sizes = [8, 128], strides = [1, 1]} : vector<8x384xf32> to vector<8x128xf32>
    %96 = arith.addf %94, %95 : vector<8x128xf32>
    %97 = arith.negf %96 : vector<8x128xf32>
    %98 = math.exp %97 : vector<8x128xf32>
    %cst_32 = arith.constant 1.000000e+00 : f32
    %99 = vector.broadcast %cst_32 : f32 to vector<8x128xf32>
    %100 = arith.addf %99, %98 : vector<8x128xf32>
    %101 = arith.divf %99, %100 : vector<8x128xf32>
    %102 = vector.extract_strided_slice %91 {offsets = [0, 128], sizes = [8, 128], strides = [1, 1]} : vector<8x384xf32> to vector<8x128xf32>
    %103 = vector.extract_strided_slice %93 {offsets = [0, 128], sizes = [8, 128], strides = [1, 1]} : vector<8x384xf32> to vector<8x128xf32>
    %104 = arith.addf %102, %103 : vector<8x128xf32>
    %105 = arith.negf %104 : vector<8x128xf32>
    %106 = math.exp %105 : vector<8x128xf32>
    %cst_33 = arith.constant 1.000000e+00 : f32
    %107 = vector.broadcast %cst_33 : f32 to vector<8x128xf32>
    %108 = arith.addf %107, %106 : vector<8x128xf32>
    %109 = arith.divf %107, %108 : vector<8x128xf32>
    %110 = vector.extract_strided_slice %91 {offsets = [0, 256], sizes = [8, 128], strides = [1, 1]} : vector<8x384xf32> to vector<8x128xf32>
    %111 = vector.extract_strided_slice %93 {offsets = [0, 256], sizes = [8, 128], strides = [1, 1]} : vector<8x384xf32> to vector<8x128xf32>
    %112 = arith.addf %111, %1 : vector<8x128xf32>
    %113 = arith.mulf %101, %112 : vector<8x128xf32>
    %114 = arith.addf %110, %113 : vector<8x128xf32>
    %115 = math.tanh %114 : vector<8x128xf32>
    %cst_34 = arith.constant 1.000000e+00 : f32
    %116 = vector.broadcast %cst_34 : f32 to vector<8x128xf32>
    %117 = arith.subf %116, %109 : vector<8x128xf32>
    %118 = arith.mulf %117, %115 : vector<8x128xf32>
    %119 = arith.mulf %109, %80 : vector<8x128xf32>
    %120 = arith.addf %118, %119 : vector<8x128xf32>
    %121 = arith.index_cast %84 : i32 to index
    %c0_35 = arith.constant 0 : index
    %122 = vector.load %arg5[%121, %c0_35] : memref<64x128xf32, #tpu.memory_space<vmem>>, vector<8x128xf32>
    tpu.vector_store %arg5[%121, %c0_35], %120 {strides = array<i32>} : memref<64x128xf32, #tpu.memory_space<vmem>>, vector<8x128xf32>,
    %c3_i32 = arith.constant 3 : i32
    %c8_i32_36 = arith.constant 8 : i32
    %123 = arith.muli %c3_i32, %c8_i32_36 : i32
    %124 = tpu.assume_multiple %123, 8 : i32
    %125 = arith.index_cast %124 : i32 to index
    %c0_37 = arith.constant 0 : index
    %126 = vector.load %arg1[%125, %c0_37] : memref<64x128xi32, #tpu.memory_space<vmem>>, vector<8x128xi32>
    %127 = arith.cmpi eq, %126, %0 : vector<8x128xi32>
    %128 = arith.extui %127 : vector<8x128xi1> to vector<8x128xi32>
    %129 = arith.sitofp %128 : vector<8x128xi32> to vector<8x128xf32>
    %c0_38 = arith.constant 0 : index
    %c0_39 = arith.constant 0 : index
    %130 = vector.load %arg2[%c0_38, %c0_39] : memref<128x384xf32, #tpu.memory_space<vmem>>, vector<128x384xf32>
    %cst_40 = arith.constant dense<0.000000e+00> : vector<8x384xf32>
    %131 = tpu.matmul %129, %130, %cst_40 {dimension_numbers = #tpu.dot_dimension_numbers<[1], [0], [0], [1], [0, 0, 1, 1], [], []>} : vector<8x128xf32>, vector<128x384xf32>, vector<8x384xf32> -> vector<8x384xf32>
    %c0_41 = arith.constant 0 : index
    %c0_42 = arith.constant 0 : index
    %132 = vector.load %arg3[%c0_41, %c0_42] : memref<128x384xf32, #tpu.memory_space<vmem>>, vector<128x384xf32>
    %cst_43 = arith.constant dense<0.000000e+00> : vector<8x384xf32>
    %133 = tpu.matmul %120, %132, %cst_43 {dimension_numbers = #tpu.dot_dimension_numbers<[1], [0], [0], [1], [0, 0, 1, 1], [], []>} : vector<8x128xf32>, vector<128x384xf32>, vector<8x384xf32> -> vector<8x384xf32>
    %134 = vector.extract_strided_slice %131 {offsets = [0, 0], sizes = [8, 128], strides = [1, 1]} : vector<8x384xf32> to vector<8x128xf32>
    %135 = vector.extract_strided_slice %133 {offsets = [0, 0], sizes = [8, 128], strides = [1, 1]} : vector<8x384xf32> to vector<8x128xf32>
    %136 = arith.addf %134, %135 : vector<8x128xf32>
    %137 = arith.negf %136 : vector<8x128xf32>
    %138 = math.exp %137 : vector<8x128xf32>
    %cst_44 = arith.constant 1.000000e+00 : f32
    %139 = vector.broadcast %cst_44 : f32 to vector<8x128xf32>
    %140 = arith.addf %139, %138 : vector<8x128xf32>
    %141 = arith.divf %139, %140 : vector<8x128xf32>
    %142 = vector.extract_strided_slice %131 {offsets = [0, 128], sizes = [8, 128], strides = [1, 1]} : vector<8x384xf32> to vector<8x128xf32>
    %143 = vector.extract_strided_slice %133 {offsets = [0, 128], sizes = [8, 128], strides = [1, 1]} : vector<8x384xf32> to vector<8x128xf32>
    %144 = arith.addf %142, %143 : vector<8x128xf32>
    %145 = arith.negf %144 : vector<8x128xf32>
    %146 = math.exp %145 : vector<8x128xf32>
    %cst_45 = arith.constant 1.000000e+00 : f32
    %147 = vector.broadcast %cst_45 : f32 to vector<8x128xf32>
    %148 = arith.addf %147, %146 : vector<8x128xf32>
    %149 = arith.divf %147, %148 : vector<8x128xf32>
    %150 = vector.extract_strided_slice %131 {offsets = [0, 256], sizes = [8, 128], strides = [1, 1]} : vector<8x384xf32> to vector<8x128xf32>
    %151 = vector.extract_strided_slice %133 {offsets = [0, 256], sizes = [8, 128], strides = [1, 1]} : vector<8x384xf32> to vector<8x128xf32>
    %152 = arith.addf %151, %1 : vector<8x128xf32>
    %153 = arith.mulf %141, %152 : vector<8x128xf32>
    %154 = arith.addf %150, %153 : vector<8x128xf32>
    %155 = math.tanh %154 : vector<8x128xf32>
    %cst_46 = arith.constant 1.000000e+00 : f32
    %156 = vector.broadcast %cst_46 : f32 to vector<8x128xf32>
    %157 = arith.subf %156, %149 : vector<8x128xf32>
    %158 = arith.mulf %157, %155 : vector<8x128xf32>
    %159 = arith.mulf %149, %120 : vector<8x128xf32>
    %160 = arith.addf %158, %159 : vector<8x128xf32>
    %161 = arith.index_cast %124 : i32 to index
    %c0_47 = arith.constant 0 : index
    %162 = vector.load %arg5[%161, %c0_47] : memref<64x128xf32, #tpu.memory_space<vmem>>, vector<8x128xf32>
    tpu.vector_store %arg5[%161, %c0_47], %160 {strides = array<i32>} : memref<64x128xf32, #tpu.memory_space<vmem>>, vector<8x128xf32>,
    %c4_i32 = arith.constant 4 : i32
    %c8_i32_48 = arith.constant 8 : i32
    %163 = arith.muli %c4_i32, %c8_i32_48 : i32
    %164 = tpu.assume_multiple %163, 8 : i32
    %165 = arith.index_cast %164 : i32 to index
    %c0_49 = arith.constant 0 : index
    %166 = vector.load %arg1[%165, %c0_49] : memref<64x128xi32, #tpu.memory_space<vmem>>, vector<8x128xi32>
    %167 = arith.cmpi eq, %166, %0 : vector<8x128xi32>
    %168 = arith.extui %167 : vector<8x128xi1> to vector<8x128xi32>
    %169 = arith.sitofp %168 : vector<8x128xi32> to vector<8x128xf32>
    %c0_50 = arith.constant 0 : index
    %c0_51 = arith.constant 0 : index
    %170 = vector.load %arg2[%c0_50, %c0_51] : memref<128x384xf32, #tpu.memory_space<vmem>>, vector<128x384xf32>
    %cst_52 = arith.constant dense<0.000000e+00> : vector<8x384xf32>
    %171 = tpu.matmul %169, %170, %cst_52 {dimension_numbers = #tpu.dot_dimension_numbers<[1], [0], [0], [1], [0, 0, 1, 1], [], []>} : vector<8x128xf32>, vector<128x384xf32>, vector<8x384xf32> -> vector<8x384xf32>
    %c0_53 = arith.constant 0 : index
    %c0_54 = arith.constant 0 : index
    %172 = vector.load %arg3[%c0_53, %c0_54] : memref<128x384xf32, #tpu.memory_space<vmem>>, vector<128x384xf32>
    %cst_55 = arith.constant dense<0.000000e+00> : vector<8x384xf32>
    %173 = tpu.matmul %160, %172, %cst_55 {dimension_numbers = #tpu.dot_dimension_numbers<[1], [0], [0], [1], [0, 0, 1, 1], [], []>} : vector<8x128xf32>, vector<128x384xf32>, vector<8x384xf32> -> vector<8x384xf32>
    %174 = vector.extract_strided_slice %171 {offsets = [0, 0], sizes = [8, 128], strides = [1, 1]} : vector<8x384xf32> to vector<8x128xf32>
    %175 = vector.extract_strided_slice %173 {offsets = [0, 0], sizes = [8, 128], strides = [1, 1]} : vector<8x384xf32> to vector<8x128xf32>
    %176 = arith.addf %174, %175 : vector<8x128xf32>
    %177 = arith.negf %176 : vector<8x128xf32>
    %178 = math.exp %177 : vector<8x128xf32>
    %cst_56 = arith.constant 1.000000e+00 : f32
    %179 = vector.broadcast %cst_56 : f32 to vector<8x128xf32>
    %180 = arith.addf %179, %178 : vector<8x128xf32>
    %181 = arith.divf %179, %180 : vector<8x128xf32>
    %182 = vector.extract_strided_slice %171 {offsets = [0, 128], sizes = [8, 128], strides = [1, 1]} : vector<8x384xf32> to vector<8x128xf32>
    %183 = vector.extract_strided_slice %173 {offsets = [0, 128], sizes = [8, 128], strides = [1, 1]} : vector<8x384xf32> to vector<8x128xf32>
    %184 = arith.addf %182, %183 : vector<8x128xf32>
    %185 = arith.negf %184 : vector<8x128xf32>
    %186 = math.exp %185 : vector<8x128xf32>
    %cst_57 = arith.constant 1.000000e+00 : f32
    %187 = vector.broadcast %cst_57 : f32 to vector<8x128xf32>
    %188 = arith.addf %187, %186 : vector<8x128xf32>
    %189 = arith.divf %187, %188 : vector<8x128xf32>
    %190 = vector.extract_strided_slice %171 {offsets = [0, 256], sizes = [8, 128], strides = [1, 1]} : vector<8x384xf32> to vector<8x128xf32>
    %191 = vector.extract_strided_slice %173 {offsets = [0, 256], sizes = [8, 128], strides = [1, 1]} : vector<8x384xf32> to vector<8x128xf32>
    %192 = arith.addf %191, %1 : vector<8x128xf32>
    %193 = arith.mulf %181, %192 : vector<8x128xf32>
    %194 = arith.addf %190, %193 : vector<8x128xf32>
    %195 = math.tanh %194 : vector<8x128xf32>
    %cst_58 = arith.constant 1.000000e+00 : f32
    %196 = vector.broadcast %cst_58 : f32 to vector<8x128xf32>
    %197 = arith.subf %196, %189 : vector<8x128xf32>
    %198 = arith.mulf %197, %195 : vector<8x128xf32>
    %199 = arith.mulf %189, %160 : vector<8x128xf32>
    %200 = arith.addf %198, %199 : vector<8x128xf32>
    %201 = arith.index_cast %164 : i32 to index
    %c0_59 = arith.constant 0 : index
    %202 = vector.load %arg5[%201, %c0_59] : memref<64x128xf32, #tpu.memory_space<vmem>>, vector<8x128xf32>
    tpu.vector_store %arg5[%201, %c0_59], %200 {strides = array<i32>} : memref<64x128xf32, #tpu.memory_space<vmem>>, vector<8x128xf32>,
    %c5_i32 = arith.constant 5 : i32
    %c8_i32_60 = arith.constant 8 : i32
    %203 = arith.muli %c5_i32, %c8_i32_60 : i32
    %204 = tpu.assume_multiple %203, 8 : i32
    %205 = arith.index_cast %204 : i32 to index
    %c0_61 = arith.constant 0 : index
    %206 = vector.load %arg1[%205, %c0_61] : memref<64x128xi32, #tpu.memory_space<vmem>>, vector<8x128xi32>
    %207 = arith.cmpi eq, %206, %0 : vector<8x128xi32>
    %208 = arith.extui %207 : vector<8x128xi1> to vector<8x128xi32>
    %209 = arith.sitofp %208 : vector<8x128xi32> to vector<8x128xf32>
    %c0_62 = arith.constant 0 : index
    %c0_63 = arith.constant 0 : index
    %210 = vector.load %arg2[%c0_62, %c0_63] : memref<128x384xf32, #tpu.memory_space<vmem>>, vector<128x384xf32>
    %cst_64 = arith.constant dense<0.000000e+00> : vector<8x384xf32>
    %211 = tpu.matmul %209, %210, %cst_64 {dimension_numbers = #tpu.dot_dimension_numbers<[1], [0], [0], [1], [0, 0, 1, 1], [], []>} : vector<8x128xf32>, vector<128x384xf32>, vector<8x384xf32> -> vector<8x384xf32>
    %c0_65 = arith.constant 0 : index
    %c0_66 = arith.constant 0 : index
    %212 = vector.load %arg3[%c0_65, %c0_66] : memref<128x384xf32, #tpu.memory_space<vmem>>, vector<128x384xf32>
    %cst_67 = arith.constant dense<0.000000e+00> : vector<8x384xf32>
    %213 = tpu.matmul %200, %212, %cst_67 {dimension_numbers = #tpu.dot_dimension_numbers<[1], [0], [0], [1], [0, 0, 1, 1], [], []>} : vector<8x128xf32>, vector<128x384xf32>, vector<8x384xf32> -> vector<8x384xf32>
    %214 = vector.extract_strided_slice %211 {offsets = [0, 0], sizes = [8, 128], strides = [1, 1]} : vector<8x384xf32> to vector<8x128xf32>
    %215 = vector.extract_strided_slice %213 {offsets = [0, 0], sizes = [8, 128], strides = [1, 1]} : vector<8x384xf32> to vector<8x128xf32>
    %216 = arith.addf %214, %215 : vector<8x128xf32>
    %217 = arith.negf %216 : vector<8x128xf32>
    %218 = math.exp %217 : vector<8x128xf32>
    %cst_68 = arith.constant 1.000000e+00 : f32
    %219 = vector.broadcast %cst_68 : f32 to vector<8x128xf32>
    %220 = arith.addf %219, %218 : vector<8x128xf32>
    %221 = arith.divf %219, %220 : vector<8x128xf32>
    %222 = vector.extract_strided_slice %211 {offsets = [0, 128], sizes = [8, 128], strides = [1, 1]} : vector<8x384xf32> to vector<8x128xf32>
    %223 = vector.extract_strided_slice %213 {offsets = [0, 128], sizes = [8, 128], strides = [1, 1]} : vector<8x384xf32> to vector<8x128xf32>
    %224 = arith.addf %222, %223 : vector<8x128xf32>
    %225 = arith.negf %224 : vector<8x128xf32>
    %226 = math.exp %225 : vector<8x128xf32>
    %cst_69 = arith.constant 1.000000e+00 : f32
    %227 = vector.broadcast %cst_69 : f32 to vector<8x128xf32>
    %228 = arith.addf %227, %226 : vector<8x128xf32>
    %229 = arith.divf %227, %228 : vector<8x128xf32>
    %230 = vector.extract_strided_slice %211 {offsets = [0, 256], sizes = [8, 128], strides = [1, 1]} : vector<8x384xf32> to vector<8x128xf32>
    %231 = vector.extract_strided_slice %213 {offsets = [0, 256], sizes = [8, 128], strides = [1, 1]} : vector<8x384xf32> to vector<8x128xf32>
    %232 = arith.addf %231, %1 : vector<8x128xf32>
    %233 = arith.mulf %221, %232 : vector<8x128xf32>
    %234 = arith.addf %230, %233 : vector<8x128xf32>
    %235 = math.tanh %234 : vector<8x128xf32>
    %cst_70 = arith.constant 1.000000e+00 : f32
    %236 = vector.broadcast %cst_70 : f32 to vector<8x128xf32>
    %237 = arith.subf %236, %229 : vector<8x128xf32>
    %238 = arith.mulf %237, %235 : vector<8x128xf32>
    %239 = arith.mulf %229, %200 : vector<8x128xf32>
    %240 = arith.addf %238, %239 : vector<8x128xf32>
    %241 = arith.index_cast %204 : i32 to index
    %c0_71 = arith.constant 0 : index
    %242 = vector.load %arg5[%241, %c0_71] : memref<64x128xf32, #tpu.memory_space<vmem>>, vector<8x128xf32>
    tpu.vector_store %arg5[%241, %c0_71], %240 {strides = array<i32>} : memref<64x128xf32, #tpu.memory_space<vmem>>, vector<8x128xf32>,
    %c6_i32 = arith.constant 6 : i32
    %c8_i32_72 = arith.constant 8 : i32
    %243 = arith.muli %c6_i32, %c8_i32_72 : i32
    %244 = tpu.assume_multiple %243, 8 : i32
    %245 = arith.index_cast %244 : i32 to index
    %c0_73 = arith.constant 0 : index
    %246 = vector.load %arg1[%245, %c0_73] : memref<64x128xi32, #tpu.memory_space<vmem>>, vector<8x128xi32>
    %247 = arith.cmpi eq, %246, %0 : vector<8x128xi32>
    %248 = arith.extui %247 : vector<8x128xi1> to vector<8x128xi32>
    %249 = arith.sitofp %248 : vector<8x128xi32> to vector<8x128xf32>
    %c0_74 = arith.constant 0 : index
    %c0_75 = arith.constant 0 : index
    %250 = vector.load %arg2[%c0_74, %c0_75] : memref<128x384xf32, #tpu.memory_space<vmem>>, vector<128x384xf32>
    %cst_76 = arith.constant dense<0.000000e+00> : vector<8x384xf32>
    %251 = tpu.matmul %249, %250, %cst_76 {dimension_numbers = #tpu.dot_dimension_numbers<[1], [0], [0], [1], [0, 0, 1, 1], [], []>} : vector<8x128xf32>, vector<128x384xf32>, vector<8x384xf32> -> vector<8x384xf32>
    %c0_77 = arith.constant 0 : index
    %c0_78 = arith.constant 0 : index
    %252 = vector.load %arg3[%c0_77, %c0_78] : memref<128x384xf32, #tpu.memory_space<vmem>>, vector<128x384xf32>
    %cst_79 = arith.constant dense<0.000000e+00> : vector<8x384xf32>
    %253 = tpu.matmul %240, %252, %cst_79 {dimension_numbers = #tpu.dot_dimension_numbers<[1], [0], [0], [1], [0, 0, 1, 1], [], []>} : vector<8x128xf32>, vector<128x384xf32>, vector<8x384xf32> -> vector<8x384xf32>
    %254 = vector.extract_strided_slice %251 {offsets = [0, 0], sizes = [8, 128], strides = [1, 1]} : vector<8x384xf32> to vector<8x128xf32>
    %255 = vector.extract_strided_slice %253 {offsets = [0, 0], sizes = [8, 128], strides = [1, 1]} : vector<8x384xf32> to vector<8x128xf32>
    %256 = arith.addf %254, %255 : vector<8x128xf32>
    %257 = arith.negf %256 : vector<8x128xf32>
    %258 = math.exp %257 : vector<8x128xf32>
    %cst_80 = arith.constant 1.000000e+00 : f32
    %259 = vector.broadcast %cst_80 : f32 to vector<8x128xf32>
    %260 = arith.addf %259, %258 : vector<8x128xf32>
    %261 = arith.divf %259, %260 : vector<8x128xf32>
    %262 = vector.extract_strided_slice %251 {offsets = [0, 128], sizes = [8, 128], strides = [1, 1]} : vector<8x384xf32> to vector<8x128xf32>
    %263 = vector.extract_strided_slice %253 {offsets = [0, 128], sizes = [8, 128], strides = [1, 1]} : vector<8x384xf32> to vector<8x128xf32>
    %264 = arith.addf %262, %263 : vector<8x128xf32>
    %265 = arith.negf %264 : vector<8x128xf32>
    %266 = math.exp %265 : vector<8x128xf32>
    %cst_81 = arith.constant 1.000000e+00 : f32
    %267 = vector.broadcast %cst_81 : f32 to vector<8x128xf32>
    %268 = arith.addf %267, %266 : vector<8x128xf32>
    %269 = arith.divf %267, %268 : vector<8x128xf32>
    %270 = vector.extract_strided_slice %251 {offsets = [0, 256], sizes = [8, 128], strides = [1, 1]} : vector<8x384xf32> to vector<8x128xf32>
    %271 = vector.extract_strided_slice %253 {offsets = [0, 256], sizes = [8, 128], strides = [1, 1]} : vector<8x384xf32> to vector<8x128xf32>
    %272 = arith.addf %271, %1 : vector<8x128xf32>
    %273 = arith.mulf %261, %272 : vector<8x128xf32>
    %274 = arith.addf %270, %273 : vector<8x128xf32>
    %275 = math.tanh %274 : vector<8x128xf32>
    %cst_82 = arith.constant 1.000000e+00 : f32
    %276 = vector.broadcast %cst_82 : f32 to vector<8x128xf32>
    %277 = arith.subf %276, %269 : vector<8x128xf32>
    %278 = arith.mulf %277, %275 : vector<8x128xf32>
    %279 = arith.mulf %269, %240 : vector<8x128xf32>
    %280 = arith.addf %278, %279 : vector<8x128xf32>
    %281 = arith.index_cast %244 : i32 to index
    %c0_83 = arith.constant 0 : index
    %282 = vector.load %arg5[%281, %c0_83] : memref<64x128xf32, #tpu.memory_space<vmem>>, vector<8x128xf32>
    tpu.vector_store %arg5[%281, %c0_83], %280 {strides = array<i32>} : memref<64x128xf32, #tpu.memory_space<vmem>>, vector<8x128xf32>,
    %c7_i32 = arith.constant 7 : i32
    %c8_i32_84 = arith.constant 8 : i32
    %283 = arith.muli %c7_i32, %c8_i32_84 : i32
    %284 = tpu.assume_multiple %283, 8 : i32
    %285 = arith.index_cast %284 : i32 to index
    %c0_85 = arith.constant 0 : index
    %286 = vector.load %arg1[%285, %c0_85] : memref<64x128xi32, #tpu.memory_space<vmem>>, vector<8x128xi32>
    %287 = arith.cmpi eq, %286, %0 : vector<8x128xi32>
    %288 = arith.extui %287 : vector<8x128xi1> to vector<8x128xi32>
    %289 = arith.sitofp %288 : vector<8x128xi32> to vector<8x128xf32>
    %c0_86 = arith.constant 0 : index
    %c0_87 = arith.constant 0 : index
    %290 = vector.load %arg2[%c0_86, %c0_87] : memref<128x384xf32, #tpu.memory_space<vmem>>, vector<128x384xf32>
    %cst_88 = arith.constant dense<0.000000e+00> : vector<8x384xf32>
    %291 = tpu.matmul %289, %290, %cst_88 {dimension_numbers = #tpu.dot_dimension_numbers<[1], [0], [0], [1], [0, 0, 1, 1], [], []>} : vector<8x128xf32>, vector<128x384xf32>, vector<8x384xf32> -> vector<8x384xf32>
    %c0_89 = arith.constant 0 : index
    %c0_90 = arith.constant 0 : index
    %292 = vector.load %arg3[%c0_89, %c0_90] : memref<128x384xf32, #tpu.memory_space<vmem>>, vector<128x384xf32>
    %cst_91 = arith.constant dense<0.000000e+00> : vector<8x384xf32>
    %293 = tpu.matmul %280, %292, %cst_91 {dimension_numbers = #tpu.dot_dimension_numbers<[1], [0], [0], [1], [0, 0, 1, 1], [], []>} : vector<8x128xf32>, vector<128x384xf32>, vector<8x384xf32> -> vector<8x384xf32>
    %294 = vector.extract_strided_slice %291 {offsets = [0, 0], sizes = [8, 128], strides = [1, 1]} : vector<8x384xf32> to vector<8x128xf32>
    %295 = vector.extract_strided_slice %293 {offsets = [0, 0], sizes = [8, 128], strides = [1, 1]} : vector<8x384xf32> to vector<8x128xf32>
    %296 = arith.addf %294, %295 : vector<8x128xf32>
    %297 = arith.negf %296 : vector<8x128xf32>
    %298 = math.exp %297 : vector<8x128xf32>
    %cst_92 = arith.constant 1.000000e+00 : f32
    %299 = vector.broadcast %cst_92 : f32 to vector<8x128xf32>
    %300 = arith.addf %299, %298 : vector<8x128xf32>
    %301 = arith.divf %299, %300 : vector<8x128xf32>
    %302 = vector.extract_strided_slice %291 {offsets = [0, 128], sizes = [8, 128], strides = [1, 1]} : vector<8x384xf32> to vector<8x128xf32>
    %303 = vector.extract_strided_slice %293 {offsets = [0, 128], sizes = [8, 128], strides = [1, 1]} : vector<8x384xf32> to vector<8x128xf32>
    %304 = arith.addf %302, %303 : vector<8x128xf32>
    %305 = arith.negf %304 : vector<8x128xf32>
    %306 = math.exp %305 : vector<8x128xf32>
    %cst_93 = arith.constant 1.000000e+00 : f32
    %307 = vector.broadcast %cst_93 : f32 to vector<8x128xf32>
    %308 = arith.addf %307, %306 : vector<8x128xf32>
    %309 = arith.divf %307, %308 : vector<8x128xf32>
    %310 = vector.extract_strided_slice %291 {offsets = [0, 256], sizes = [8, 128], strides = [1, 1]} : vector<8x384xf32> to vector<8x128xf32>
    %311 = vector.extract_strided_slice %293 {offsets = [0, 256], sizes = [8, 128], strides = [1, 1]} : vector<8x384xf32> to vector<8x128xf32>
    %312 = arith.addf %311, %1 : vector<8x128xf32>
    %313 = arith.mulf %301, %312 : vector<8x128xf32>
    %314 = arith.addf %310, %313 : vector<8x128xf32>
    %315 = math.tanh %314 : vector<8x128xf32>
    %cst_94 = arith.constant 1.000000e+00 : f32
    %316 = vector.broadcast %cst_94 : f32 to vector<8x128xf32>
    %317 = arith.subf %316, %309 : vector<8x128xf32>
    %318 = arith.mulf %317, %315 : vector<8x128xf32>
    %319 = arith.mulf %309, %280 : vector<8x128xf32>
    %320 = arith.addf %318, %319 : vector<8x128xf32>
    %321 = arith.index_cast %284 : i32 to index
    %c0_95 = arith.constant 0 : index
    %322 = vector.load %arg5[%321, %c0_95] : memref<64x128xf32, #tpu.memory_space<vmem>>, vector<8x128xf32>
    tpu.vector_store %arg5[%321, %c0_95], %320 {strides = array<i32>} : memref<64x128xf32, #tpu.memory_space<vmem>>, vector<8x128xf32>,
    %c8_i32_96 = arith.constant 8 : i32
    %c0_97 = arith.constant 0 : index
    %c0_98 = arith.constant 0 : index
    %323 = vector.load %arg6[%c0_97, %c0_98] : memref<8x128xf32, #tpu.memory_space<vmem>>, vector<8x128xf32>
    tpu.vector_store %arg6[%c0_97, %c0_98], %320 {strides = array<i32>} : memref<8x128xf32, #tpu.memory_space<vmem>>, vector<8x128xf32>,
    return
  }
  func.func @transform_0(%arg0: i32) -> (i32, i32) {
    %c0_i32 = arith.constant 0 : i32
    %c0_i32_0 = arith.constant 0 : i32
    return %arg0, %c0_i32 : i32, i32
  }
  func.func @transform_1(%arg0: i32) -> (i32, i32) {
    %c0_i32 = arith.constant 0 : i32
    %c0_i32_0 = arith.constant 0 : i32
    %c0_i32_1 = arith.constant 0 : i32
    return %c0_i32, %c0_i32_0 : i32, i32
  }
  func.func @transform_2(%arg0: i32) -> (i32, i32) {
    %c0_i32 = arith.constant 0 : i32
    %c0_i32_0 = arith.constant 0 : i32
    %c0_i32_1 = arith.constant 0 : i32
    return %c0_i32, %c0_i32_0 : i32, i32
  }
  func.func @transform_3(%arg0: i32) -> (i32, i32) {
    %c0_i32 = arith.constant 0 : i32
    %c0_i32_0 = arith.constant 0 : i32
    %c0_i32_1 = arith.constant 0 : i32
    return %c0_i32, %c0_i32_0 : i32, i32
  }
  func.func @transform_4(%arg0: i32) -> (i32, i32) {
    %c0_i32 = arith.constant 0 : i32
    %c0_i32_0 = arith.constant 0 : i32
    return %arg0, %c0_i32 : i32, i32
  }
  func.func @transform_5(%arg0: i32) -> (i32, i32) {
    %c0_i32 = arith.constant 0 : i32
    %c0_i32_0 = arith.constant 0 : i32
    return %arg0, %c0_i32 : i32, i32
  }
}

</mosaic_0001>

<bundles_post_ra>
// kernel: tpu_custom_call.1
= control target key start
LH: loop header
LB: loop body
LE: loop exit
PB: predicated region body
PF: predicated region fallthrough
CT: control target
= control target key end

     0   :  { %11 = vsyncpa [#allocation3], 0  ;;  %s6403_s0 = inlined_call_operand.hbm [shape: s32[64,128], index: 0, kind: input, shape index: {}]   ;;  %s6404_s1 = inlined_call_operand.hbm [shape: f32[128,384], index: 1, kind: input, shape index: {}]   ;;  %s6405_s2 = inlined_call_operand.hbm [shape: f32[128,384], index: 2, kind: input, shape index: {}]   ;;  %s6406_s3 = inlined_call_operand.vmem [shape: f32[8,128], index: 3, kind: input, shape index: {}]   ;;  %s6407_s4 = inlined_call_operand.hbm [shape: f32[64,128], index: 4, kind: output, shape index: {0}]   ;;  %s6408_s5 = inlined_call_operand.hbm [shape: f32[8,128], index: 5, kind: output, shape index: {1}]  }
   0x1   :  { %12 = vsyncpa [#allocation6], 0 }
   0x2   :  { %13 = vsyncpa [#allocation4], 0 }
   0x3   :  { %14 = vsyncpa [#allocation10], 0  ;;  %s5348_s18 = smov [#allocation5]   ;;  %s5230_s22 = scalar_lea.hbm %s6404_s1, 6144 }
   0x4   :  { %s32_s19 = sshll.u32 %s5348_s18, 4  ;;  %p5231_p0 = scmp.ne.s32.totalorder %s6404_s1, %s5230_s22  ;;  %s33_s19 = int_to_ptr.vmem [resolvable:$true] %s32_s19 }
   0x5   :  { %p5234_p1 = scmp.lt.u32.totalorder %s5230_s22, %s6404_s1 }
   0x7   :  { %p5236_p2 = pnand %p5234_p1, %p5231_p0 }
   0x9   :  { %5239 = shalt.err (!%p5236_p2)
}
   0xa   :  { %s5240_s27 = scalar_lea.vmem %s33_s19, 6144  ;;  %p5245_p4 = scmp.lt.s32.totalorder %s33_s19, %s33_s19 }
   0xb   :  { %p5241_p3 = scmp.ne.s32.totalorder %s33_s19, %s5240_s27  ;;  %p5246_p5 = scmp.lt.s32.totalorder %s5240_s27, %s5240_s27 }
   0xd   :  { %p5247_p6 = por %p5246_p5, %p5245_p4 }
   0xf   :  { %p5248_p7 = pnand %p5247_p6, %p5241_p3 }
  0x11   :  { %5251 = shalt.err (!%p5248_p7)
}
  0x12   :  { %s5349_s28 = smov 384   ;;  %s5350_s29 = smov 24  }
  0x13   :  { %38 = dma.hbm_to_vmem [thread:$0]  %s6404_s1, 6144, %s33_s19, [#allocation6], %s5349_s28, %s5349_s28, %s5350_s29  }
  0x14   :  { %s5351_s7 = smov [#allocation2]   ;;  %s5252_s11 = scalar_lea.hbm %s6403_s0, 1024 }
  0x15   :  { %s20_s8 = sshll.u32 %s5351_s7, 4  ;;  %p5253_p8 = scmp.ne.s32.totalorder %s6403_s0, %s5252_s11  ;;  %s21_s8 = int_to_ptr.vmem [resolvable:$true] %s20_s8 }
  0x16   :  { %p5256_p9 = scmp.lt.u32.totalorder %s5252_s11, %s6403_s0 }
  0x18   :  { %p5258_p10 = pnand %p5256_p9, %p5253_p8 }
  0x1a   :  { %5261 = shalt.err (!%p5258_p10)
}
  0x1b   :  { %s5262_s16 = scalar_lea.vmem %s21_s8, 1024  ;;  %p5267_p12 = scmp.lt.s32.totalorder %s21_s8, %s21_s8 }
  0x1c   :  { %p5263_p11 = scmp.ne.s32.totalorder %s21_s8, %s5262_s16  ;;  %p5268_p13 = scmp.lt.s32.totalorder %s5262_s16, %s5262_s16 }
  0x1e   :  { %p5269_p0 = por %p5268_p13, %p5267_p12 }
  0x20   :  { %p5270_p1 = pnand %p5269_p0, %p5263_p11 }
  0x22   :  { %5273 = shalt.err (!%p5270_p1)
}
  0x23   :  { %s5352_s1 = smov 128   ;;  %s5353_s17 = smov 8  }
  0x24   :  { %26 = dma.hbm_to_vmem [thread:$0]  %s6403_s0, 1024, %s21_s8, [#allocation3], %s5352_s1, %s5352_s1, %s5353_s17  }
  0x25   :  { %s5354_s20 = smov [#allocation7]   ;;  %s5274_s24 = scalar_lea.hbm %s6405_s2, 6144 }
  0x26   :  { %s44_s21 = sshll.u32 %s5354_s20, 4  ;;  %p5275_p2 = scmp.ne.s32.totalorder %s6405_s2, %s5274_s24  ;;  %s45_s21 = int_to_ptr.vmem [resolvable:$true] %s44_s21 }
  0x27   :  { %p5278_p3 = scmp.lt.u32.totalorder %s5274_s24, %s6405_s2 }
  0x29   :  { %p5280_p4 = pnand %p5278_p3, %p5275_p2 }
  0x2b   :  { %5283 = shalt.err (!%p5280_p4)
}
  0x2c   :  { %s5284_s6 = scalar_lea.vmem %s45_s21, 6144  ;;  %p5289_p6 = scmp.lt.s32.totalorder %s45_s21, %s45_s21 }
  0x2d   :  { %p5285_p5 = scmp.ne.s32.totalorder %s45_s21, %s5284_s6  ;;  %p5290_p7 = scmp.lt.s32.totalorder %s5284_s6, %s5284_s6 }
  0x2f   :  { %p5291_p8 = por %p5290_p7, %p5289_p6 }
  0x31   :  { %p5292_p9 = pnand %p5291_p8, %p5285_p5 }
  0x33   :  { %5295 = shalt.err (!%p5292_p9)
}
  0x34   :  { %50 = dma.hbm_to_vmem [thread:$0]  %s6405_s2, 6144, %s45_s21, [#allocation6], %s5349_s28, %s5349_s28, %s5350_s29  }
  0x35   :  { %5340 = dma.done.wait [#allocation3], 1024  }
  0x36   :  { %5341 = vsyncadd [#allocation3], 4294966272 }
  0x37   :  { %5342 = dma.done.wait [#allocation6], 12288  }
  0x38   :  { %5343 = vsyncadd [#allocation6], 4294955008  ;;  %v6421_v0 = vmov 0.0|0.0   ;;  %v6411_v1 = vmov 0.0   ;;  %vm5357_vm0 = vmmov 0   ;;  %v70_v2 = vld [vmem:[#allocation5 + $0x8] sm:$0xff]  ;;  %v62_v61 = vlaneseq }
  0x39   :  { %4256 = vmatprep.subr.bf16.mxu1 %v6421_v0  ;;  %181 = vmatprep.mubr.f32.mxu0 %v6411_v1  ;;  %v73_v3 = vld [vmem:[#allocation5 + $0x20] sm:$0xff]  ;;  %v72_v6 = vld [vmem:[#allocation5 + $0x18] sm:$0xff]  ;;  %v79_v8 = vld [vmem:[#allocation5 + $0x50] sm:$0xff]  ;;  %s5360_s10 = smov [#allocation9]  }
  0x3a   :  { %3696 = vmatprep.mubr.msk.f32.mxu1 %vm5357_vm0, %v6411_v1  ;;  %v69_v4 = vld [vmem:[#allocation5] sm:$0xff]  ;;  %v5440_v5 = vpack.c.bf16 %v73_v3, %v70_v2  ;;  %v76_v7 = vld [vmem:[#allocation5 + $0x38] sm:$0xff]  ;;  %v75_v11 = vld [vmem:[#allocation5 + $0x30] sm:$0xff]  ;;  %s3338_s11 = sshll.u32 %s5360_s10, 4  ;;  %s3339_s11 = int_to_ptr.vmem [resolvable:$true] %s3338_s11 }
  0x3b   :  { %v5442_v9 = vpack.c.bf16 %v72_v6, %v69_v4  ;;  %v5444_v10 = vpack.c.bf16 %v79_v8, %v76_v7  ;;  %v78_v12 = vld [vmem:[#allocation5 + $0x48] sm:$0xff]  ;;  %v85_v14 = vld [vmem:[#allocation5 + $0x80] sm:$0xff]  ;;  %v84_v18 = vld [vmem:[#allocation5 + $0x78] sm:$0xff] }
  0x3c   :  { %v82_v13 = vld [vmem:[#allocation5 + $0x68] sm:$0xff]  ;;  %4225 = vmatprep.subr.bf16.mxu0 %v5440_v5  ;;  %v5448_v15 = vpack.c.bf16 %v78_v12, %v75_v11  ;;  %v81_v17 = vld [vmem:[#allocation5 + $0x60] sm:$0xff]  ;;  %v88_v19 = vld [vmem:[#allocation5 + $0x98] sm:$0xff]  ;;  %v5504_v11 = vand.u32 127, %v62_v61 }
  0x3d   :  { %4227 = vmatpush1.bf16.msra.mxu0 %v5442_v9  ;;  %v5451_v16 = vpack.c.bf16 %v85_v14, %v82_v13  ;;  %v91_v20 = vld [vmem:[#allocation5 + $0xb0] sm:$0xff]  ;;  %v5454_v21 = vpack.c.bf16 %v84_v18, %v81_v17  ;;  %v90_v25 = vld [vmem:[#allocation5 + $0xa8] sm:$0xff]  ;;  %v97_v28 = vld [vmem:[#allocation5 + $0xe0] sm:$0xff] }
  0x3e   :  { %4229 = vmatprep.subr.bf16.mxu0 %v5444_v10  ;;  %v71_v22 = vld [vmem:[#allocation5 + $0x10] sm:$0xff]  ;;  %v5457_v23 = vpack.c.bf16 %v91_v20, %v88_v19  ;;  %v74_v26 = vld [vmem:[#allocation5 + $0x28] sm:$0xff]  ;;  %v77_v30 = vld [vmem:[#allocation5 + $0x40] sm:$0xff] }
  0x3f   :  { %v87_v24 = vld [vmem:[#allocation5 + $0x90] sm:$0xff]  ;;  %v94_v27 = vld [vmem:[#allocation5 + $0xc8] sm:$0xff]  ;;  %v5459_v29 = vpack.c.bf16 %v74_v26, %v71_v22  ;;  %v80_v31 = vld [vmem:[#allocation5 + $0x58] sm:$0xff] }
  0x40   :  { %v5462_v32 = vpack.c.bf16 %v90_v25, %v87_v24  ;;  %v93_v33 = vld [vmem:[#allocation5 + $0xc0] sm:$0xff]  ;;  %v5465_v34 = vpack.c.bf16 %v80_v31, %v77_v30  ;;  %v5468_v35 = vpack.c.bf16 %v97_v28, %v94_v27  ;;  %v96_v36 = vld [vmem:[#allocation5 + $0xd8] sm:$0xff]  ;;  %v83_v37 = vld [vmem:[#allocation5 + $0x70] sm:$0xff] }
  0x41   :  { %4231 = vmatpush1.bf16.msra.mxu0 %v5448_v15  ;;  %4258 = vmatpush3.bf16.msra.mxu1 %v5459_v29  ;;  %v86_v38 = vld [vmem:[#allocation5 + $0x88] sm:$0xff]  ;;  %v100_v39 = vld [vmem:[#allocation5 + $0xf8] sm:$0xff]  ;;  %v103_v40 = vld [vmem:[#allocation5 + $0x110] sm:$0xff]  ;;  %v5472_v41 = vpack.c.bf16 %v96_v36, %v93_v33 }
  0x42   :  { %4233 = vmatprep.subr.bf16.mxu0 %v5451_v16  ;;  %4259 = vmatprep.subr.bf16.mxu1 %v6421_v0  ;;  %v99_v42 = vld [vmem:[#allocation5 + $0xf0] sm:$0xff]  ;;  %v5475_v43 = vpack.c.bf16 %v86_v38, %v83_v37  ;;  %v5478_v44 = vpack.c.bf16 %v103_v40, %v100_v39  ;;  %v102_v45 = vld [vmem:[#allocation5 + $0x108] sm:$0xff]  ;;  %v89_v46 = vld [vmem:[#allocation5 + $0xa0] sm:$0xff]  ;;  %v6409_v38 = vmov 1.0  }
  0x43   :  { %v92_v47 = vld [vmem:[#allocation5 + $0xb8] sm:$0xff]  ;;  %v106_v48 = vld [vmem:[#allocation5 + $0x128] sm:$0xff]  ;;  %v109_v49 = vld [vmem:[#allocation5 + $0x140] sm:$0xff]  ;;  %v5482_v50 = vpack.c.bf16 %v102_v45, %v99_v42 }
  0x44   :  { %v105_v51 = vld [vmem:[#allocation5 + $0x120] sm:$0xff]  ;;  %v5485_v52 = vpack.c.bf16 %v92_v47, %v89_v46  ;;  %v5488_v53 = vpack.c.bf16 %v109_v49, %v106_v48  ;;  %v108_v54 = vld [vmem:[#allocation5 + $0x138] sm:$0xff]  ;;  %v95_v55 = vld [vmem:[#allocation5 + $0xd0] sm:$0xff] }
  0x45   :  { %4235 = vmatpush1.bf16.msra.mxu0 %v5454_v21  ;;  %4261 = vmatpush3.bf16.msra.mxu1 %v5465_v34  ;;  %v98_v56 = vld [vmem:[#allocation5 + $0xe8] sm:$0xff]  ;;  %v112_v57 = vld [vmem:[#allocation5 + $0x158] sm:$0xff]  ;;  %v115_v58 = vld [vmem:[#allocation5 + $0x170] sm:$0xff]  ;;  %v5492_v59 = vpack.c.bf16 %v108_v54, %v105_v51 }
  0x46   :  { %4237 = vmatprep.subr.bf16.mxu0 %v5457_v23  ;;  %4262 = vmatprep.subr.bf16.mxu1 %v6421_v0  ;;  %v111_v60 = vld [vmem:[#allocation5 + $0x150] sm:$0xff]  ;;  %v5495_v62 = vpack.c.bf16 %v98_v56, %v95_v55  ;;  %v5498_v63 = vpack.c.bf16 %v115_v58, %v112_v57  ;;  %v114_v2 = vld [vmem:[#allocation5 + $0x168] sm:$0xff]  ;;  %v101_v3 = vld [vmem:[#allocation5 + $0x100] sm:$0xff] }
  0x47   :  { %v104_v4 = vld [vmem:[#allocation5 + $0x118] sm:$0xff]  ;;  %v259_v6 = vld [vmem:[#allocation7 + $0x8] sm:$0xff]  ;;  %v262_v7 = vld [vmem:[#allocation7 + $0x20] sm:$0xff]  ;;  %v5502_v8 = vpack.c.bf16 %v114_v2, %v111_v60 }
  0x48   :  { %v65_v12 = vld [vmem:[#allocation2] sm:$0xff]  ;;  %v5507_v14 = vpack.c.bf16 %v104_v4, %v101_v3  ;;  %v5510_v17 = vpack.c.bf16 %v262_v7, %v259_v6  ;;  %v261_v18 = vld [vmem:[#allocation7 + $0x18] sm:$0xff]  ;;  %v107_v19 = vld [vmem:[#allocation5 + $0x130] sm:$0xff] }
  0x49   :  { %4239 = vmatpush1.bf16.msra.mxu0 %v5462_v32  ;;  %4264 = vmatpush3.bf16.msra.mxu1 %v5475_v43  ;;  %v258_v13 = vld [vmem:[#allocation7] sm:$0xff]  ;;  %v110_v20 = vld [vmem:[#allocation5 + $0x148] sm:$0xff]  ;;  %v265_v22 = vld [vmem:[#allocation7 + $0x38] sm:$0xff]  ;;  %vm66_vm1 = vcmp.eq.s32.totalorder %v65_v12, %v5504_v11 }
  0x4a   :  { %4241 = vmatprep.subr.bf16.mxu0 %v5468_v35  ;;  %4265 = vmatprep.subr.bf16.mxu1 %v6421_v0  ;;  %v268_v24 = vld [vmem:[#allocation7 + $0x50] sm:$0xff]  ;;  %v5515_v25 = vpack.c.bf16 %v261_v18, %v258_v13  ;;  %v5518_v27 = vpack.c.bf16 %v110_v20, %v107_v19  ;;  %v267_v30 = vld [vmem:[#allocation7 + $0x48] sm:$0xff]  ;;  %v113_v31 = vld [vmem:[#allocation5 + $0x160] sm:$0xff] }
  0x4b   :  { %v264_v26 = vld [vmem:[#allocation7 + $0x30] sm:$0xff]  ;;  %v5521_v28 = vpack.c.bf16 %v268_v24, %v265_v22  ;;  %v116_v33 = vld [vmem:[#allocation5 + $0x178] sm:$0xff]  ;;  %v271_v36 = vld [vmem:[#allocation7 + $0x68] sm:$0xff] }
  0x4c   :  { %v274_v37 = vld [vmem:[#allocation7 + $0x80] sm:$0xff]  ;;  %v5528_v39 = vpack.c.bf16 %v267_v30, %v264_v26  ;;  %v5531_v42 = vpack.c.bf16 %v116_v33, %v113_v31  ;;  %v273_v46 = vld [vmem:[#allocation7 + $0x78] sm:$0xff]  ;;  %v260_v47 = vld [vmem:[#allocation7 + $0x10] sm:$0xff] }
  0x4d   :  { %4243 = vmatpush1.bf16.msra.mxu0 %v5472_v41  ;;  %4267 = vmatpush3.bf16.msra.mxu1 %v5485_v52  ;;  %v270_v40 = vld [vmem:[#allocation7 + $0x60] sm:$0xff]  ;;  %v5534_v45 = vpack.c.bf16 %v274_v37, %v271_v36  ;;  %v263_v48 = vld [vmem:[#allocation7 + $0x28] sm:$0xff]  ;;  %v277_v49 = vld [vmem:[#allocation7 + $0x98] sm:$0xff] }
  0x4e   :  { %4245 = vmatprep.subr.bf16.mxu0 %v5478_v44  ;;  %4268 = vmatprep.subr.bf16.mxu1 %v6421_v0  ;;  %v280_v51 = vld [vmem:[#allocation7 + $0xb0] sm:$0xff]  ;;  %v5539_v54 = vpack.c.bf16 %v273_v46, %v270_v40  ;;  %v5542_v56 = vpack.c.bf16 %v263_v48, %v260_v47  ;;  %v279_v58 = vld [vmem:[#allocation7 + $0xa8] sm:$0xff]  ;;  %v266_v60 = vld [vmem:[#allocation7 + $0x40] sm:$0xff] }
  0x4f   :  { %v276_v55 = vld [vmem:[#allocation7 + $0x90] sm:$0xff]  ;;  %v5545_v57 = vpack.c.bf16 %v280_v51, %v277_v49  ;;  %v269_v61 = vld [vmem:[#allocation7 + $0x58] sm:$0xff]  ;;  %v283_v2 = vld [vmem:[#allocation7 + $0xc8] sm:$0xff] }
  0x50   :  { %v286_v3 = vld [vmem:[#allocation7 + $0xe0] sm:$0xff]  ;;  %v5552_v4 = vpack.c.bf16 %v279_v58, %v276_v55  ;;  %v5555_v7 = vpack.c.bf16 %v269_v61, %v266_v60  ;;  %v285_v18 = vld [vmem:[#allocation7 + $0xd8] sm:$0xff]  ;;  %v272_v19 = vld [vmem:[#allocation7 + $0x70] sm:$0xff] }
  0x51   :  { %4247 = vmatpush1.bf16.msra.mxu0 %v5482_v50  ;;  %4270 = vmatpush3.bf16.msra.mxu1 %v5495_v62  ;;  %v282_v6 = vld [vmem:[#allocation7 + $0xc0] sm:$0xff]  ;;  %v5558_v13 = vpack.c.bf16 %v286_v3, %v283_v2  ;;  %v275_v20 = vld [vmem:[#allocation7 + $0x88] sm:$0xff]  ;;  %v289_v12 = vld [vmem:[#allocation7 + $0xf8] sm:$0xff] }
  0x52   :  { %4249 = vmatprep.subr.bf16.mxu0 %v5488_v53  ;;  %4271 = vmatprep.subr.bf16.mxu1 %v6421_v0  ;;  %v292_v22 = vld [vmem:[#allocation7 + $0x110] sm:$0xff]  ;;  %v5564_v24 = vpack.c.bf16 %v285_v18, %v282_v6  ;;  %v5567_v30 = vpack.c.bf16 %v275_v20, %v272_v19  ;;  %v291_v33 = vld [vmem:[#allocation7 + $0x108] sm:$0xff]  ;;  %v278_v36 = vld [vmem:[#allocation7 + $0xa0] sm:$0xff] }
  0x53   :  { %v288_v26 = vld [vmem:[#allocation7 + $0xf0] sm:$0xff]  ;;  %v5570_v31 = vpack.c.bf16 %v292_v22, %v289_v12  ;;  %v281_v37 = vld [vmem:[#allocation7 + $0xb8] sm:$0xff]  ;;  %v295_v40 = vld [vmem:[#allocation7 + $0x128] sm:$0xff] }
  0x54   :  { %v298_v46 = vld [vmem:[#allocation7 + $0x140] sm:$0xff]  ;;  %v5574_v47 = vpack.c.bf16 %v291_v33, %v288_v26  ;;  %v5577_v49 = vpack.c.bf16 %v281_v37, %v278_v36  ;;  %v297_v55 = vld [vmem:[#allocation7 + $0x138] sm:$0xff]  ;;  %v284_v58 = vld [vmem:[#allocation7 + $0xd0] sm:$0xff] }
  0x55   :  { %4251 = vmatpush1.bf16.msra.mxu0 %v5492_v59  ;;  %4273 = vmatpush3.bf16.msra.mxu1 %v5507_v14  ;;  %v294_v48 = vld [vmem:[#allocation7 + $0x120] sm:$0xff]  ;;  %v5580_v51 = vpack.c.bf16 %v298_v46, %v295_v40  ;;  %v287_v60 = vld [vmem:[#allocation7 + $0xe8] sm:$0xff]  ;;  %v301_v61 = vld [vmem:[#allocation7 + $0x158] sm:$0xff] }
  0x56   :  { %4253 = vmatprep.subr.bf16.mxu0 %v5498_v63  ;;  %4274 = vmatprep.subr.bf16.mxu1 %v6421_v0  ;;  %v304_v2 = vld [vmem:[#allocation7 + $0x170] sm:$0xff]  ;;  %v5584_v3 = vpack.c.bf16 %v297_v55, %v294_v48  ;;  %v5587_v18 = vpack.c.bf16 %v287_v60, %v284_v58  ;;  %v303_v20 = vld [vmem:[#allocation7 + $0x168] sm:$0xff]  ;;  %v290_v12 = vld [vmem:[#allocation7 + $0x100] sm:$0xff] }
  0x57   :  { %v300_v6 = vld [vmem:[#allocation7 + $0x150] sm:$0xff]  ;;  %v5590_v19 = vpack.c.bf16 %v304_v2, %v301_v61  ;;  %v293_v22 = vld [vmem:[#allocation7 + $0x118] sm:$0xff]  ;;  %v299_v37 = vld [vmem:[#allocation7 + $0x148] sm:$0xff] }
  0x58   :  { %v5594_v26 = vpack.c.bf16 %v303_v20, %v300_v6  ;;  %v5597_v33 = vpack.c.bf16 %v293_v22, %v290_v12  ;;  %v296_v36 = vld [vmem:[#allocation7 + $0x130] sm:$0xff]  ;;  %v302_v46 = vld [vmem:[#allocation7 + $0x160] sm:$0xff]  ;;  %v305_v48 = vld [vmem:[#allocation7 + $0x178] sm:$0xff] }
  0x59   :  { %4255 = vmatpush1.bf16.msra.mxu0 %v5502_v8  ;;  %4276 = vmatpush3.bf16.msra.mxu1 %v5518_v27  ;;  %v5603_v40 = vpack.c.bf16 %v299_v37, %v296_v36  ;;  %v5609_v55 = vpack.c.bf16 %v305_v48, %v302_v46  ;;  %v471_v58 = vld [vmem:[#allocation2 + $0x8] sm:$0xff] }
  0x5a   :  { %4281 = vmatprep.subr.bf16.mxu0 %v5510_v17  ;;  %4277 = vmatprep.subr.bf16.mxu1 %v6421_v0  ;;  %vm472_vm2 = vcmp.eq.s32.totalorder %v471_v58, %v5504_v11 }
  0x5c   :  { %3353 = vmatmul.mubr.msk.f32.vlgmr.msra.gmra.mrb[0].mxu0 %vm66_vm1, %v6409_v38 }
  0x5d   :  { %4283 = vmatpush1.bf16.msra.mxu0 %v5515_v25  ;;  %370 = vmatprep.mubr.f32.mxu0 %v6411_v1 }
  0x5e   :  { %4285 = vmatprep.subr.bf16.mxu0 %v5521_v28  ;;  %4279 = vmatpush3.bf16.msra.mxu1 %v5531_v42 }
  0x5f   :  { %4312 = vmatprep.subr.bf16.mxu1 %v6421_v0 }
  0x61   :  { %4287 = vmatpush1.bf16.msra.mxu0 %v5528_v39  ;;  %3697 = vmatmul.mubr.msk.f32.vlgmr.msra.gmra.mrb[0].mxu1 %vm66_vm1, %v6409_v38 }
  0x62   :  { %4289 = vmatprep.subr.bf16.mxu0 %v5534_v45  ;;  %4314 = vmatpush3.bf16.msra.mxu1 %v5542_v56 }
  0x63   :  { %4315 = vmatprep.subr.bf16.mxu1 %v6421_v0  ;;  %3731 = vmatprep.mubr.msk.f32.mxu1 %vm5357_vm0, %v6411_v1 }
  0x65   :  { %4291 = vmatpush1.bf16.msra.mxu0 %v5539_v54 }
  0x66   :  { %4293 = vmatprep.subr.bf16.mxu0 %v5545_v57  ;;  %4317 = vmatpush3.bf16.msra.mxu1 %v5555_v7 }
  0x67   :  { %4318 = vmatprep.subr.bf16.mxu1 %v6421_v0 }
  0x69   :  { %4295 = vmatpush1.bf16.msra.mxu0 %v5552_v4 }
  0x6a   :  { %4297 = vmatprep.subr.bf16.mxu0 %v5558_v13  ;;  %4320 = vmatpush3.bf16.msra.mxu1 %v5567_v30 }
  0x6b   :  { %4321 = vmatprep.subr.bf16.mxu1 %v6421_v0 }
  0x6d   :  { %4299 = vmatpush1.bf16.msra.mxu0 %v5564_v24 }
  0x6e   :  { %4301 = vmatprep.subr.bf16.mxu0 %v5570_v31  ;;  %4323 = vmatpush3.bf16.msra.mxu1 %v5577_v49 }
  0x6f   :  { %4324 = vmatprep.subr.bf16.mxu1 %v6421_v0 }
  0x71   :  { %4303 = vmatpush1.bf16.msra.mxu0 %v5574_v47 }
  0x72   :  { %4305 = vmatprep.subr.bf16.mxu0 %v5580_v51  ;;  %4326 = vmatpush3.bf16.msra.mxu1 %v5587_v18 }
  0x73   :  { %4327 = vmatprep.subr.bf16.mxu1 %v6421_v0 }
  0x75   :  { %4307 = vmatpush1.bf16.msra.mxu0 %v5584_v3 }
  0x76   :  { %4309 = vmatprep.subr.bf16.mxu0 %v5590_v19  ;;  %4329 = vmatpush3.bf16.msra.mxu1 %v5597_v33 }
  0x77   :  { %4330 = vmatprep.subr.bf16.mxu1 %v6421_v0 }
  0x79   :  { %4311 = vmatpush1.bf16.msra.mxu0 %v5594_v26 }
  0x7a   :  { %4337 = vmatprep.subr.bf16.mxu0 %v5440_v5  ;;  %4332 = vmatpush3.bf16.msra.mxu1 %v5603_v40 }
  0x7b   :  { %4333 = vmatprep.subr.bf16.mxu1 %v6421_v0 }
  0x7c   :  { %371 = vmatmul.mubr.f32.vlgmr.msra.gmra.mrb[0].mxu0 %v6411_v1 }
  0x7d   :  { %4339 = vmatpush1.bf16.msra.mxu0 %v5442_v9  ;;  %587 = vmatprep.mubr.f32.mxu0 %v6411_v1 }
  0x7e   :  { %4341 = vmatprep.subr.bf16.mxu0 %v5444_v10  ;;  %4335 = vmatpush3.bf16.msra.mxu1 %v5609_v55 }
  0x7f   :  { %4368 = vmatprep.subr.bf16.mxu1 %v6421_v0 }
  0x81   :  { %4343 = vmatpush1.bf16.msra.mxu0 %v5448_v15  ;;  %3732 = vmatmul.mubr.f32.vlgmr.msra.gmra.mrb[2].mxu1 %v6411_v1 }
  0x82   :  { %4345 = vmatprep.subr.bf16.mxu0 %v5451_v16  ;;  %4370 = vmatpush3.bf16.msra.mxu1 %v5459_v29 }
  0x83   :  { %4371 = vmatprep.subr.bf16.mxu1 %v6421_v0  ;;  %3766 = vmatprep.mubr.msk.f32.mxu1 %vm5357_vm0, %v6411_v1 }
  0x85   :  { %4347 = vmatpush1.bf16.msra.mxu0 %v5454_v21 }
  0x86   :  { %4349 = vmatprep.subr.bf16.mxu0 %v5457_v23  ;;  %4373 = vmatpush3.bf16.msra.mxu1 %v5465_v34 }
  0x87   :  { %4374 = vmatprep.subr.bf16.mxu1 %v6421_v0 }
  0x89   :  { %4351 = vmatpush1.bf16.msra.mxu0 %v5462_v32 }
  0x8a   :  { %4353 = vmatprep.subr.bf16.mxu0 %v5468_v35  ;;  %4376 = vmatpush3.bf16.msra.mxu1 %v5475_v43 }
  0x8b   :  { %4377 = vmatprep.subr.bf16.mxu1 %v6421_v0 }
  0x8d   :  { %4355 = vmatpush1.bf16.msra.mxu0 %v5472_v41 }
  0x8e   :  { %4357 = vmatprep.subr.bf16.mxu0 %v5478_v44  ;;  %4379 = vmatpush3.bf16.msra.mxu1 %v5485_v52 }
  0x8f   :  { %4380 = vmatprep.subr.bf16.mxu1 %v6421_v0 }
  0x91   :  { %4359 = vmatpush1.bf16.msra.mxu0 %v5482_v50 }
  0x92   :  { %4361 = vmatprep.subr.bf16.mxu0 %v5488_v53  ;;  %4382 = vmatpush3.bf16.msra.mxu1 %v5495_v62 }
  0x93   :  { %4383 = vmatprep.subr.bf16.mxu1 %v6421_v0 }
  0x95   :  { %4363 = vmatpush1.bf16.msra.mxu0 %v5492_v59 }
  0x96   :  { %4365 = vmatprep.subr.bf16.mxu0 %v5498_v63  ;;  %4385 = vmatpush3.bf16.msra.mxu1 %v5507_v14 }
  0x97   :  { %4386 = vmatprep.subr.bf16.mxu1 %v6421_v0 }
  0x99   :  { %4367 = vmatpush1.bf16.msra.mxu0 %v5502_v8 }
  0x9a   :  { %4393 = vmatprep.subr.bf16.mxu0 %v5510_v17  ;;  %4388 = vmatpush3.bf16.msra.mxu1 %v5518_v27 }
  0x9b   :  { %4389 = vmatprep.subr.bf16.mxu1 %v6421_v0 }
  0x9c   :  { %3358 = vmatmul.mubr.msk.f32.vlgmr.msra.gmra.mrb[2].mxu0 %vm472_vm2, %v6409_v38 }
  0x9d   :  { %4395 = vmatpush1.bf16.msra.mxu0 %v5515_v25  ;;  %776 = vmatprep.mubr.f32.mxu0 %v6411_v1 }
  0x9e   :  { %4391 = vmatpush3.bf16.msra.mxu1 %v5531_v42  ;;  %4397 = vmatprep.subr.bf16.mxu0 %v5521_v28 }
  0x9f   :  { %4424 = vmatprep.subr.bf16.mxu1 %v6421_v0 }
  0xa1   :  { %3767 = vmatmul.mubr.msk.f32.vlgmr.msra.gmra.mrb[4].mxu1 %vm472_vm2, %v6409_v38  ;;  %4399 = vmatpush1.bf16.msra.mxu0 %v5528_v39 }
  0xa2   :  { %4426 = vmatpush3.bf16.msra.mxu1 %v5542_v56  ;;  %3801 = vmatprep.mubr.msk.f32.mxu1 %vm5357_vm0, %v6411_v1 }
  0xa3   :  { %4427 = vmatprep.subr.bf16.mxu1 %v6421_v0  ;;  %4401 = vmatprep.subr.bf16.mxu0 %v5534_v45 }
  0xa5   :  { %4403 = vmatpush1.bf16.msra.mxu0 %v5539_v54 }
  0xa6   :  { %4429 = vmatpush3.bf16.msra.mxu1 %v5555_v7  ;;  %4405 = vmatprep.subr.bf16.mxu0 %v5545_v57 }
  0xa7   :  { %4430 = vmatprep.subr.bf16.mxu1 %v6421_v0 }
  0xa9   :  { %4407 = vmatpush1.bf16.msra.mxu0 %v5552_v4 }
  0xaa   :  { %4432 = vmatpush3.bf16.msra.mxu1 %v5567_v30  ;;  %4409 = vmatprep.subr.bf16.mxu0 %v5558_v13 }
  0xab   :  { %4433 = vmatprep.subr.bf16.mxu1 %v6421_v0 }
  0xad   :  { %4411 = vmatpush1.bf16.msra.mxu0 %v5564_v24 }
  0xae   :  { %4435 = vmatpush3.bf16.msra.mxu1 %v5577_v49  ;;  %4413 = vmatprep.subr.bf16.mxu0 %v5570_v31 }
  0xaf   :  { %4436 = vmatprep.subr.bf16.mxu1 %v6421_v0 }
  0xb1   :  { %4415 = vmatpush1.bf16.msra.mxu0 %v5574_v47 }
  0xb2   :  { %4438 = vmatpush3.bf16.msra.mxu1 %v5587_v18  ;;  %4417 = vmatprep.subr.bf16.mxu0 %v5580_v51 }
  0xb3   :  { %4439 = vmatprep.subr.bf16.mxu1 %v6421_v0 }
  0xb5   :  { %4419 = vmatpush1.bf16.msra.mxu0 %v5584_v3 }
  0xb6   :  { %4441 = vmatpush3.bf16.msra.mxu1 %v5597_v33  ;;  %4421 = vmatprep.subr.bf16.mxu0 %v5590_v19 }
  0xb7   :  { %4442 = vmatprep.subr.bf16.mxu1 %v6421_v0 }
  0xb9   :  { %4423 = vmatpush1.bf16.msra.mxu0 %v5594_v26 }
  0xba   :  { %4444 = vmatpush3.bf16.msra.mxu1 %v5603_v40  ;;  %4449 = vmatprep.subr.bf16.mxu0 %v5440_v5  ;;  %v5691_v5 = vld [vmem:[%s6406_s3] sm:$0xff] }
  0xbb   :  { %4445 = vmatprep.subr.bf16.mxu1 %v6421_v0 }
  0xbe   :  { %4447 = vmatpush3.bf16.msra.mxu1 %v5609_v55 }
  0xbf   :  { %4480 = vmatprep.subr.bf16.mxu1 %v6421_v0 }
 0x134   :  { %v254_v60 = vpop.f32.mrb[0].mxu1 }
 0x135   :  { %v3698_v61 = vpop.f32.mrb[1].mxu1 }
 0x14f   :  { %v372_v2 = vpop.f32.mrb[0].mxu0 }
 0x150   :  { %v3355_v6 = vmul.f32 -1.442695, %v372_v2  ;;  %v374_v20 = vpop.f32.mrb[1].mxu0 }
 0x151   :  { %v3356_v12 = vmul.f32 -1.442695, %v374_v20 }
 0x152   :  { %5149 = vpow2.f32 %v3355_v6 }
 0x153   :  { %5151 = vpow2.f32 %v3356_v12 }
 0x154   :  { %v443_v22 = vpop.f32.mrb[2].mxu1 }
 0x155   :  { %v3733_v36 = vpop.f32.mrb[3].mxu1  ;;  %v461_v61 = vadd.f32 %v443_v22, %v5691_v5  ;;  %v1308_v22 = vld [vmem:[#allocation5 + $0x98] sm:$0xff] }
 0x15c   :  { %v5150_v37 = vpop.eup %5149 }
 0x15d   :  { %v451_v46 = vadd.f32 1.0, %v5150_v37  ;;  %v5152_v48 = vpop.eup %5151 }
 0x15e   :  { %v458_v58 = vadd.f32 1.0, %v5152_v48  ;;  %v1311_v48 = vld [vmem:[#allocation5 + $0xb0] sm:$0xff] }
 0x15f   :  { %5153 = vrcp.f32 %v451_v46 }
 0x160   :  { %5155 = vrcp.f32 %v458_v58 }
 0x169   :  { %v5154_v38 = vpop.eup %5153 }
 0x16a   :  { %v462_v2 = vmul.f32 %v5154_v38, %v461_v61  ;;  %v5156_v20 = vpop.eup %5155  ;;  %v6434_v38 = vmov 0.0  }
 0x16b   :  { %v465_v36 = vsub.f32 1.0, %v5156_v20  ;;  %v467_v37 = vmul.f32 0.0, %v5156_v20  ;;  %v1310_v20 = vld [vmem:[#allocation5 + $0xa8] sm:$0xff] }
 0x16c   :  { %v463_v6 = vadd.f32 %v462_v2, %v254_v60  ;;  %v1306_v60 = vld [vmem:[#allocation5 + $0x88] sm:$0xff]  ;;  %v1307_v2 = vld [vmem:[#allocation5 + $0x90] sm:$0xff] }
 0x16e   :  { %5157 = vtanh.f32 %v463_v6  ;;  %v5808_v6 = vpack.c.bf16 %v1311_v48, %v1308_v22  ;;  %v1478_v48 = vld [vmem:[#allocation7] sm:$0xff] }
 0x178   :  { %v5158_v12 = vpop.eup %5157 }
 0x179   :  { %v466_v1 = vmul.f32 %v5158_v12, %v465_v36  ;;  %v1309_v36 = vld [vmem:[#allocation5 + $0xa0] sm:$0xff]  ;;  %v1312_v12 = vld [vmem:[#allocation5 + $0xb8] sm:$0xff] }
 0x17b   :  { %v5694_v46 = vadd.f32 %v467_v37, %v466_v1  ;;  %v660_v1 = vpop.f32.mrb[4].mxu1  ;;  %v1314_v37 = vld [vmem:[#allocation5 + $0xc8] sm:$0xff] }
 0x17d   :  { %469 = vst [vmem:[#allocation8] sm:$0xff] %v5694_v46  ;;  %777 = vmatmul.mubr.f32.vlgmr.msra.gmra.mrb[2].mxu0 %v5694_v46  ;;  %3802 = vmatmul.mubr.f32.vlgmr.msra.gmra.mrb[6].mxu1 %v5694_v46 }
 0x17e   :  { %4451 = vmatpush1.bf16.msra.mxu0 %v5442_v9  ;;  %4482 = vmatpush3.bf16.msra.mxu1 %v5459_v29  ;;  %v3768_v9 = vpop.f32.mrb[5].mxu1 }
 0x17f   :  { %4453 = vmatprep.subr.bf16.mxu0 %v5444_v10  ;;  %4483 = vmatprep.subr.bf16.mxu1 %v6421_v0  ;;  %v878_v10 = vld [vmem:[#allocation2 + $0x10] sm:$0xff]  ;;  %v5814_v9 = vpack.c.bf16 %v1312_v12, %v1309_v36  ;;  %v1285_v36 = vld [vmem:[#allocation2 + $0x18] sm:$0xff] }
 0x180   :  { %994 = vmatprep.mubr.f32.mxu0 %v6434_v38  ;;  %3836 = vmatprep.mubr.msk.f32.mxu1 %vm5357_vm0, %v6434_v38  ;;  %vm879_vm3 = vcmp.eq.s32.totalorder %v878_v10, %v5504_v11  ;;  %v1313_v10 = vld [vmem:[#allocation5 + $0xc0] sm:$0xff]  ;;  %vm1286_vm4 = vcmp.eq.s32.totalorder %v1285_v36, %v5504_v11 }
 0x181   :  { %v1506_v36 = vld [vmem:[#allocation7 + $0xe0] sm:$0xff] }
 0x182   :  { %4455 = vmatpush1.bf16.msra.mxu0 %v5448_v15  ;;  %4485 = vmatpush3.bf16.msra.mxu1 %v5465_v34  ;;  %v6435_v15 = vmov 1.0  }
 0x183   :  { %4457 = vmatprep.subr.bf16.mxu0 %v5451_v16  ;;  %4486 = vmatprep.subr.bf16.mxu1 %v6421_v0  ;;  %v1290_v16 = vld [vmem:[#allocation5 + $0x8] sm:$0xff] }
 0x186   :  { %4459 = vmatpush1.bf16.msra.mxu0 %v5454_v21  ;;  %4488 = vmatpush3.bf16.msra.mxu1 %v5475_v43  ;;  %v1293_v21 = vld [vmem:[#allocation5 + $0x20] sm:$0xff] }
 0x187   :  { %4461 = vmatprep.subr.bf16.mxu0 %v5457_v23  ;;  %4489 = vmatprep.subr.bf16.mxu1 %v6421_v0  ;;  %v5771_v23 = vpack.c.bf16 %v1293_v21, %v1290_v16  ;;  %v1316_v21 = vld [vmem:[#allocation5 + $0xd8] sm:$0xff] }
 0x189   :  { %6436 = vst [vmem:[#allocation15_spill] sm:$0xff] %v5771_v23 }
 0x18a   :  { %4463 = vmatpush1.bf16.msra.mxu0 %v5462_v32  ;;  %4491 = vmatpush3.bf16.msra.mxu1 %v5485_v52 }
 0x18b   :  { %4465 = vmatprep.subr.bf16.mxu0 %v5468_v35  ;;  %4492 = vmatprep.subr.bf16.mxu1 %v6421_v0 }
 0x18e   :  { %4467 = vmatpush1.bf16.msra.mxu0 %v5472_v41  ;;  %4494 = vmatpush3.bf16.msra.mxu1 %v5495_v62 }
 0x18f   :  { %4469 = vmatprep.subr.bf16.mxu0 %v5478_v44  ;;  %4495 = vmatprep.subr.bf16.mxu1 %v6421_v0 }
 0x192   :  { %4471 = vmatpush1.bf16.msra.mxu0 %v5482_v50  ;;  %4497 = vmatpush3.bf16.msra.mxu1 %v5507_v14 }
 0x193   :  { %4473 = vmatprep.subr.bf16.mxu0 %v5488_v53  ;;  %4498 = vmatprep.subr.bf16.mxu1 %v6421_v0 }
 0x196   :  { %4475 = vmatpush1.bf16.msra.mxu0 %v5492_v59  ;;  %4500 = vmatpush3.bf16.msra.mxu1 %v5518_v27  ;;  %v1292_v27 = vld [vmem:[#allocation5 + $0x18] sm:$0xff] }
 0x197   :  { %4477 = vmatprep.subr.bf16.mxu0 %v5498_v63  ;;  %4501 = vmatprep.subr.bf16.mxu1 %v6421_v0 }
 0x19a   :  { %4479 = vmatpush1.bf16.msra.mxu0 %v5502_v8  ;;  %4503 = vmatpush3.bf16.msra.mxu1 %v5531_v42 }
 0x19b   :  { %4505 = vmatprep.subr.bf16.mxu0 %v5510_v17  ;;  %4536 = vmatprep.subr.bf16.mxu1 %v6421_v0  ;;  %v1289_v17 = vld [vmem:[#allocation5] sm:$0xff] }
 0x19d   :  { %3363 = vmatmul.mubr.msk.f32.vlgmr.msra.gmra.mrb[4].mxu0 %vm879_vm3, %v6435_v15  ;;  %3837 = vmatmul.mubr.msk.f32.vlgmr.msra.gmra.mrb[8].mxu1 %vm879_vm3, %v6435_v15 }
 0x19e   :  { %4507 = vmatpush1.bf16.msra.mxu0 %v5515_v25  ;;  %4538 = vmatpush3.bf16.msra.mxu1 %v5542_v56 }
 0x19f   :  { %4509 = vmatprep.subr.bf16.mxu0 %v5521_v28  ;;  %4539 = vmatprep.subr.bf16.mxu1 %v6421_v0  ;;  %v1291_v28 = vld [vmem:[#allocation5 + $0x10] sm:$0xff] }
 0x1a0   :  { %1183 = vmatprep.mubr.f32.mxu0 %v6434_v38  ;;  %3871 = vmatprep.mubr.msk.f32.mxu1 %vm5357_vm0, %v6434_v38 }
 0x1a2   :  { %4511 = vmatpush1.bf16.msra.mxu0 %v5528_v39  ;;  %4541 = vmatpush3.bf16.msra.mxu1 %v5555_v7  ;;  %v1294_v39 = vld [vmem:[#allocation5 + $0x28] sm:$0xff] }
 0x1a3   :  { %4513 = vmatprep.subr.bf16.mxu0 %v5534_v45  ;;  %4542 = vmatprep.subr.bf16.mxu1 %v6421_v0  ;;  %v1296_v45 = vld [vmem:[#allocation5 + $0x38] sm:$0xff]  ;;  %v5778_v7 = vpack.c.bf16 %v1294_v39, %v1291_v28  ;;  %v1325_v28 = vld [vmem:[#allocation5 + $0x120] sm:$0xff] }
 0x1a4   :  { %v1328_v39 = vld [vmem:[#allocation5 + $0x138] sm:$0xff] }
 0x1a6   :  { %4515 = vmatpush1.bf16.msra.mxu0 %v5539_v54  ;;  %4544 = vmatpush3.bf16.msra.mxu1 %v5567_v30  ;;  %v1299_v54 = vld [vmem:[#allocation5 + $0x50] sm:$0xff] }
 0x1a7   :  { %4517 = vmatprep.subr.bf16.mxu0 %v5545_v57  ;;  %4545 = vmatprep.subr.bf16.mxu1 %v6421_v0  ;;  %v5782_v30 = vpack.c.bf16 %v1299_v54, %v1296_v45  ;;  %v5845_v45 = vpack.c.bf16 %v1328_v39, %v1325_v28  ;;  %v1330_v54 = vld [vmem:[#allocation5 + $0x148] sm:$0xff]  ;;  %v1493_v28 = vld [vmem:[#allocation7 + $0x78] sm:$0xff]  ;;  %v1492_v39 = vld [vmem:[#allocation7 + $0x70] sm:$0xff] }
 0x1aa   :  { %4519 = vmatpush1.bf16.msra.mxu0 %v5552_v4  ;;  %4547 = vmatpush3.bf16.msra.mxu1 %v5577_v49  ;;  %v5776_v4 = vpack.c.bf16 %v1292_v27, %v1289_v17  ;;  %v1300_v49 = vld [vmem:[#allocation5 + $0x58] sm:$0xff]  ;;  %v1326_v17 = vld [vmem:[#allocation5 + $0x128] sm:$0xff] }
 0x1ab   :  { %4521 = vmatprep.subr.bf16.mxu0 %v5558_v13  ;;  %4548 = vmatprep.subr.bf16.mxu1 %v6421_v0  ;;  %v1295_v13 = vld [vmem:[#allocation5 + $0x30] sm:$0xff] }
 0x1ae   :  { %4523 = vmatpush1.bf16.msra.mxu0 %v5564_v24  ;;  %4550 = vmatpush3.bf16.msra.mxu1 %v5587_v18 }
 0x1af   :  { %4525 = vmatprep.subr.bf16.mxu0 %v5570_v31  ;;  %4551 = vmatprep.subr.bf16.mxu1 %v6421_v0  ;;  %v1298_v31 = vld [vmem:[#allocation5 + $0x48] sm:$0xff] }
 0x1b0   :  { %v5789_v18 = vpack.c.bf16 %v1298_v31, %v1295_v13  ;;  %v1335_v13 = vld [vmem:[#allocation5 + $0x170] sm:$0xff] }
 0x1b2   :  { %4527 = vmatpush1.bf16.msra.mxu0 %v5574_v47  ;;  %4553 = vmatpush3.bf16.msra.mxu1 %v5597_v33  ;;  %v1297_v47 = vld [vmem:[#allocation5 + $0x40] sm:$0xff] }
 0x1b3   :  { %4529 = vmatprep.subr.bf16.mxu0 %v5580_v51  ;;  %4554 = vmatprep.subr.bf16.mxu1 %v6421_v0  ;;  %v1302_v51 = vld [vmem:[#allocation5 + $0x68] sm:$0xff] }
 0x1b6   :  { %4531 = vmatpush1.bf16.msra.mxu0 %v5584_v3  ;;  %4556 = vmatpush3.bf16.msra.mxu1 %v5603_v40  ;;  %v1305_v3 = vld [vmem:[#allocation5 + $0x80] sm:$0xff]  ;;  %v1304_v40 = vld [vmem:[#allocation5 + $0x78] sm:$0xff] }
 0x1b7   :  { %4533 = vmatprep.subr.bf16.mxu0 %v5590_v19  ;;  %4557 = vmatprep.subr.bf16.mxu1 %v6421_v0  ;;  %v5791_v19 = vpack.c.bf16 %v1300_v49, %v1297_v47  ;;  %v5795_v33 = vpack.c.bf16 %v1305_v3, %v1302_v51  ;;  %v1331_v47 = vld [vmem:[#allocation5 + $0x150] sm:$0xff]  ;;  %v1334_v49 = vld [vmem:[#allocation5 + $0x168] sm:$0xff]  ;;  %v1333_v51 = vld [vmem:[#allocation5 + $0x160] sm:$0xff] }
 0x1b8   :  { %v5855_v3 = vpack.c.bf16 %v1334_v49, %v1331_v47  ;;  %v1500_v47 = vld [vmem:[#allocation7 + $0xb0] sm:$0xff] }
 0x1ba   :  { %4535 = vmatpush1.bf16.msra.mxu0 %v5594_v26  ;;  %4559 = vmatpush3.bf16.msra.mxu1 %v5609_v55  ;;  %v1301_v26 = vld [vmem:[#allocation5 + $0x60] sm:$0xff]  ;;  %v1303_v55 = vld [vmem:[#allocation5 + $0x70] sm:$0xff] }
 0x1bb   :  { %4592 = vmatprep.subr.bf16.mxu1 %v6421_v0  ;;  %4561 = vmatprep.subr.bf16.mxu0 %v5771_v23  ;;  %v5802_v58 = vpack.c.bf16 %v1304_v40, %v1301_v26  ;;  %v5804_v61 = vpack.c.bf16 %v1306_v60, %v1303_v55  ;;  %v1336_v26 = vld [vmem:[#allocation5 + $0x178] sm:$0xff]  ;;  %v1479_v55 = vld [vmem:[#allocation7 + $0x8] sm:$0xff]  ;;  %v1482_v60 = vld [vmem:[#allocation7 + $0x20] sm:$0xff] }
 0x1bc   :  { %v5858_v40 = vpack.c.bf16 %v1336_v26, %v1333_v51  ;;  %v5862_v22 = vpack.c.bf16 %v1482_v60, %v1479_v55  ;;  %v1496_v51 = vld [vmem:[#allocation7 + $0x90] sm:$0xff]  ;;  %v1499_v26 = vld [vmem:[#allocation7 + $0xa8] sm:$0xff]  ;;  %v1498_v55 = vld [vmem:[#allocation7 + $0xa0] sm:$0xff] }
 0x1bd   :  { %v5901_v60 = vpack.c.bf16 %v1499_v26, %v1496_v51  ;;  %v1515_v26 = vld [vmem:[#allocation7 + $0x128] sm:$0xff] }
 0x250   :  { %v778_v29 = vpop.f32.mrb[2].mxu0  ;;  %v849_v32 = vpop.f32.mrb[6].mxu1 }
 0x251   :  { %v3360_v34 = vmul.f32 -1.442695, %v778_v29  ;;  %v780_v35 = vpop.f32.mrb[3].mxu0  ;;  %v3803_v41 = vpop.f32.mrb[7].mxu1  ;;  %v867_v59 = vadd.f32 %v849_v32, %v5691_v5  ;;  %v1315_v29 = vld [vmem:[#allocation5 + $0xd0] sm:$0xff]  ;;  %v1318_v32 = vld [vmem:[#allocation5 + $0xe8] sm:$0xff] }
 0x252   :  { %v3361_v43 = vmul.f32 -1.442695, %v780_v35  ;;  %v5824_v35 = vpack.c.bf16 %v1318_v32, %v1315_v29  ;;  %v1484_v32 = vld [vmem:[#allocation7 + $0x30] sm:$0xff] }
 0x253   :  { %5159 = vpow2.f32 %v3360_v34  ;;  %v5822_v34 = vpack.c.bf16 %v1316_v21, %v1313_v10  ;;  %v1485_v10 = vld [vmem:[#allocation7 + $0x38] sm:$0xff]  ;;  %v1488_v21 = vld [vmem:[#allocation7 + $0x50] sm:$0xff] }
 0x254   :  { %5161 = vpow2.f32 %v3361_v43  ;;  %v5875_v29 = vpack.c.bf16 %v1488_v21, %v1485_v10  ;;  %v1502_v10 = vld [vmem:[#allocation7 + $0xc0] sm:$0xff]  ;;  %v1505_v21 = vld [vmem:[#allocation7 + $0xd8] sm:$0xff] }
 0x25d   :  { %v5160_v44 = vpop.eup %5159 }
 0x25e   :  { %v857_v50 = vadd.f32 1.0, %v5160_v44  ;;  %v5162_v52 = vpop.eup %5161  ;;  %v1320_v44 = vld [vmem:[#allocation5 + $0xf8] sm:$0xff] }
 0x25f   :  { %v864_v53 = vadd.f32 1.0, %v5162_v52 }
 0x260   :  { %5163 = vrcp.f32 %v857_v50  ;;  %v1323_v50 = vld [vmem:[#allocation5 + $0x110] sm:$0xff] }
 0x261   :  { %5165 = vrcp.f32 %v864_v53  ;;  %v5833_v52 = vpack.c.bf16 %v1323_v50, %v1320_v44  ;;  %v1319_v53 = vld [vmem:[#allocation5 + $0xf0] sm:$0xff]  ;;  %v1486_v44 = vld [vmem:[#allocation7 + $0x40] sm:$0xff] }
 0x26a   :  { %v5164_v62 = vpop.eup %5163 }
 0x26b   :  { %v868_v63 = vmul.f32 %v5164_v62, %v867_v59  ;;  %v5166_v14 = vpop.eup %5165  ;;  %v1322_v59 = vld [vmem:[#allocation5 + $0x108] sm:$0xff]  ;;  %v1321_v62 = vld [vmem:[#allocation5 + $0x100] sm:$0xff] }
 0x26c   :  { %v871_v25 = vsub.f32 1.0, %v5166_v14  ;;  %v873_v57 = vmul.f32 %v5166_v14, %v5694_v46  ;;  %v1317_v46 = vld [vmem:[#allocation5 + $0xe0] sm:$0xff] }
 0x26d   :  { %v869_v8 = vadd.f32 %v868_v63, %v660_v1  ;;  %v5812_v1 = vpack.c.bf16 %v1310_v20, %v1307_v2  ;;  %v5818_v16 = vpack.c.bf16 %v1317_v46, %v1314_v37  ;;  %v5835_v63 = vpack.c.bf16 %v1322_v59, %v1319_v53  ;;  %v1481_v2 = vld [vmem:[#allocation7 + $0x18] sm:$0xff]  ;;  %v1480_v20 = vld [vmem:[#allocation7 + $0x10] sm:$0xff]  ;;  %v1483_v37 = vld [vmem:[#allocation7 + $0x28] sm:$0xff] }
 0x26e   :  { %v5865_v12 = vpack.c.bf16 %v1481_v2, %v1478_v48  ;;  %v5869_v46 = vpack.c.bf16 %v1483_v37, %v1480_v20  ;;  %v1489_v53 = vld [vmem:[#allocation7 + $0x58] sm:$0xff]  ;;  %v1503_v20 = vld [vmem:[#allocation7 + $0xc8] sm:$0xff] }
 0x26f   :  { %5167 = vtanh.f32 %v869_v8  ;;  %v1324_v8 = vld [vmem:[#allocation5 + $0x118] sm:$0xff]  ;;  %v5882_v59 = vpack.c.bf16 %v1489_v53, %v1486_v44  ;;  %v5908_v37 = vpack.c.bf16 %v1506_v36, %v1503_v20  ;;  %v1507_v44 = vld [vmem:[#allocation7 + $0xe8] sm:$0xff] }
 0x270   :  { %v5831_v41 = vpop.f32.mrb[8].mxu1  ;;  %v5838_v14 = vpack.c.bf16 %v1324_v8, %v1321_v62  ;;  %v1491_v62 = vld [vmem:[#allocation7 + $0x68] sm:$0xff]  ;;  %v1494_v8 = vld [vmem:[#allocation7 + $0x80] sm:$0xff]  ;;  %v1501_v48 = vld [vmem:[#allocation7 + $0xb8] sm:$0xff] }
 0x271   :  { %v3838_v43 = vpop.f32.mrb[9].mxu1  ;;  %v5904_v2 = vpack.c.bf16 %v1501_v48, %v1498_v55  ;;  %v1518_v55 = vld [vmem:[#allocation7 + $0x140] sm:$0xff]  ;;  %v1517_v36 = vld [vmem:[#allocation7 + $0x138] sm:$0xff] }
 0x272   :  { %v1487_v43 = vld [vmem:[#allocation7 + $0x48] sm:$0xff]  ;;  %v1514_v48 = vld [vmem:[#allocation7 + $0x120] sm:$0xff]  ;;  %v5926_v20 = vpack.c.bf16 %v1518_v55, %v1515_v26  ;;  %v1525_v26 = vld [vmem:[#allocation7 + $0x178] sm:$0xff] }
 0x273   :  { %v5878_v50 = vpack.c.bf16 %v1487_v43, %v1484_v32  ;;  %v1504_v32 = vld [vmem:[#allocation7 + $0xd0] sm:$0xff]  ;;  %v5911_v43 = vpack.c.bf16 %v1505_v21, %v1502_v10  ;;  %v1519_v21 = vld [vmem:[#allocation7 + $0x148] sm:$0xff] }
 0x274   :  { %v5914_v53 = vpack.c.bf16 %v1507_v44, %v1504_v32  ;;  %6438 = vst [vmem:[#allocation17_spill] sm:$0xff] %v5926_v20  ;;  %v1516_v10 = vld [vmem:[#allocation7 + $0x130] sm:$0xff]  ;;  %v1521_v32 = vld [vmem:[#allocation7 + $0x158] sm:$0xff] }
 0x275   :  { %v1524_v44 = vld [vmem:[#allocation7 + $0x170] sm:$0xff] }
 0x279   :  { %v5168_v42 = vpop.eup %5167 }
 0x27a   :  { %v872_v56 = vmul.f32 %v5168_v42, %v871_v25  ;;  %v1329_v25 = vld [vmem:[#allocation5 + $0x140] sm:$0xff]  ;;  %v1327_v42 = vld [vmem:[#allocation5 + $0x130] sm:$0xff] }
 0x27b   :  { %v5842_v27 = vpack.c.bf16 %v1329_v25, %v1326_v17  ;;  %v5888_v17 = vpack.c.bf16 %v1494_v8, %v1491_v62  ;;  %v1490_v25 = vld [vmem:[#allocation7 + $0x60] sm:$0xff]  ;;  %v1509_v62 = vld [vmem:[#allocation7 + $0xf8] sm:$0xff]  ;;  %v1512_v8 = vld [vmem:[#allocation7 + $0x110] sm:$0xff] }
 0x27c   :  { %v5780_v24 = vadd.f32 %v873_v57, %v872_v56  ;;  %v5848_v56 = vpack.c.bf16 %v1330_v54, %v1327_v42  ;;  %v1332_v57 = vld [vmem:[#allocation5 + $0x158] sm:$0xff]  ;;  %v5891_v42 = vpack.c.bf16 %v1493_v28, %v1490_v25  ;;  %v1495_v54 = vld [vmem:[#allocation7 + $0x88] sm:$0xff]  ;;  %v1508_v25 = vld [vmem:[#allocation7 + $0xf0] sm:$0xff]  ;;  %v5918_v28 = vpack.c.bf16 %v1512_v8, %v1509_v62 }
 0x27d   :  { %v5852_v31 = vpack.c.bf16 %v1335_v13, %v1332_v57  ;;  %v5894_v57 = vpack.c.bf16 %v1495_v54, %v1492_v39  ;;  %v1497_v13 = vld [vmem:[#allocation7 + $0x98] sm:$0xff]  ;;  %v1511_v39 = vld [vmem:[#allocation7 + $0x108] sm:$0xff]  ;;  %v1510_v54 = vld [vmem:[#allocation7 + $0x100] sm:$0xff]  ;;  %v5930_v62 = vpack.c.bf16 %v1517_v36, %v1514_v48  ;;  %v5932_v8 = vpack.c.bf16 %v1519_v21, %v1516_v10 }
 0x27e   :  { %876 = vst [vmem:[#allocation8 + $0x8] sm:$0xff] %v5780_v24  ;;  %1184 = vmatmul.mubr.f32.vlgmr.msra.gmra.mrb[4].mxu0 %v5780_v24  ;;  %3872 = vmatmul.mubr.f32.vlgmr.msra.gmra.mrb[10].mxu1 %v5780_v24  ;;  %v5898_v49 = vpack.c.bf16 %v1500_v47, %v1497_v13  ;;  %v1513_v13 = vld [vmem:[#allocation7 + $0x118] sm:$0xff]  ;;  %v5921_v47 = vpack.c.bf16 %v1511_v39, %v1508_v25  ;;  %v1520_v25 = vld [vmem:[#allocation7 + $0x150] sm:$0xff] }
 0x27f   :  { %4563 = vmatpush1.bf16.msra.mxu0 %v5776_v4  ;;  %4594 = vmatpush3.bf16.msra.mxu1 %v5778_v7  ;;  %v5923_v51 = vpack.c.bf16 %v1513_v13, %v1510_v54  ;;  %6439 = vst [vmem:[#allocation18_spill] sm:$0xff] %v5930_v62  ;;  %6440 = vst [vmem:[#allocation19_spill] sm:$0xff] %v5932_v8  ;;  %v5936_v39 = vpack.c.bf16 %v1524_v44, %v1521_v32  ;;  %v1523_v54 = vld [vmem:[#allocation7 + $0x168] sm:$0xff]  ;;  %v1522_v13 = vld [vmem:[#allocation7 + $0x160] sm:$0xff] }
 0x280   :  { %4565 = vmatprep.subr.bf16.mxu0 %v5782_v30  ;;  %4595 = vmatprep.subr.bf16.mxu1 %v6421_v0  ;;  %v5940_v55 = vpack.c.bf16 %v1523_v54, %v1520_v25  ;;  %v5942_v48 = vpack.c.bf16 %v1525_v26, %v1522_v13 }
 0x281   :  { %1401 = vmatprep.mubr.f32.mxu0 %v6434_v38  ;;  %3906 = vmatprep.mubr.msk.f32.mxu1 %vm5357_vm0, %v6434_v38  ;;  %6437 = vst [vmem:[#allocation16_spill] sm:$0xff] %v5923_v51  ;;  %6441 = vst [vmem:[#allocation20_spill] sm:$0xff] %v5936_v39 }
 0x282   :  { %6442 = vst [vmem:[#allocation21_spill] sm:$0xff] %v5940_v55  ;;  %6443 = vst [vmem:[#allocation22_spill] sm:$0xff] %v5942_v48 }
 0x283   :  { %4567 = vmatpush1.bf16.msra.mxu0 %v5789_v18  ;;  %4597 = vmatpush3.bf16.msra.mxu1 %v5791_v19 }
 0x284   :  { %4569 = vmatprep.subr.bf16.mxu0 %v5795_v33  ;;  %4598 = vmatprep.subr.bf16.mxu1 %v6421_v0 }
 0x287   :  { %4571 = vmatpush1.bf16.msra.mxu0 %v5802_v58  ;;  %4600 = vmatpush3.bf16.msra.mxu1 %v5804_v61 }
 0x288   :  { %4573 = vmatprep.subr.bf16.mxu0 %v5808_v6  ;;  %4601 = vmatprep.subr.bf16.mxu1 %v6421_v0 }
 0x28b   :  { %4575 = vmatpush1.bf16.msra.mxu0 %v5812_v1  ;;  %4603 = vmatpush3.bf16.msra.mxu1 %v5814_v9 }
 0x28c   :  { %4577 = vmatprep.subr.bf16.mxu0 %v5818_v16  ;;  %4604 = vmatprep.subr.bf16.mxu1 %v6421_v0 }
 0x28f   :  { %4579 = vmatpush1.bf16.msra.mxu0 %v5822_v34  ;;  %4606 = vmatpush3.bf16.msra.mxu1 %v5824_v35 }
 0x290   :  { %4607 = vmatprep.subr.bf16.mxu1 %v6421_v0  ;;  %4581 = vmatprep.subr.bf16.mxu0 %v5833_v52 }
 0x293   :  { %4583 = vmatpush1.bf16.msra.mxu0 %v5835_v63  ;;  %4609 = vmatpush3.bf16.msra.mxu1 %v5838_v14 }
 0x294   :  { %4610 = vmatprep.subr.bf16.mxu1 %v6421_v0  ;;  %4585 = vmatprep.subr.bf16.mxu0 %v5842_v27 }
 0x297   :  { %4587 = vmatpush1.bf16.msra.mxu0 %v5845_v45  ;;  %4612 = vmatpush3.bf16.msra.mxu1 %v5848_v56 }
 0x298   :  { %4613 = vmatprep.subr.bf16.mxu1 %v6421_v0  ;;  %4589 = vmatprep.subr.bf16.mxu0 %v5852_v31 }
 0x29b   :  { %4591 = vmatpush1.bf16.msra.mxu0 %v5855_v3  ;;  %4615 = vmatpush3.bf16.msra.mxu1 %v5858_v40 }
 0x29c   :  { %4648 = vmatprep.subr.bf16.mxu1 %v6421_v0  ;;  %4617 = vmatprep.subr.bf16.mxu0 %v5862_v22 }
 0x29e   :  { %3368 = vmatmul.mubr.msk.f32.vlgmr.msra.gmra.mrb[6].mxu0 %vm1286_vm4, %v6435_v15  ;;  %3907 = vmatmul.mubr.msk.f32.vlgmr.msra.gmra.mrb[12].mxu1 %vm1286_vm4, %v6435_v15 }
 0x29f   :  { %4619 = vmatpush1.bf16.msra.mxu0 %v5865_v12  ;;  %4650 = vmatpush3.bf16.msra.mxu1 %v5869_v46 }
 0x2a0   :  { %4651 = vmatprep.subr.bf16.mxu1 %v6421_v0  ;;  %1590 = vmatprep.mubr.f32.mxu0 %v6434_v38 }
 0x2a1   :  { %4621 = vmatprep.subr.bf16.mxu0 %v5875_v29  ;;  %3941 = vmatprep.mubr.msk.f32.mxu1 %vm5357_vm0, %v6434_v38 }
 0x2a3   :  { %4623 = vmatpush1.bf16.msra.mxu0 %v5878_v50  ;;  %4653 = vmatpush3.bf16.msra.mxu1 %v5882_v59 }
 0x2a4   :  { %4654 = vmatprep.subr.bf16.mxu1 %v6421_v0  ;;  %4625 = vmatprep.subr.bf16.mxu0 %v5888_v17 }
 0x2a7   :  { %4627 = vmatpush1.bf16.msra.mxu0 %v5891_v42  ;;  %4656 = vmatpush3.bf16.msra.mxu1 %v5894_v57 }
 0x2a8   :  { %4657 = vmatprep.subr.bf16.mxu1 %v6421_v0  ;;  %4629 = vmatprep.subr.bf16.mxu0 %v5898_v49 }
 0x2ab   :  { %4631 = vmatpush1.bf16.msra.mxu0 %v5901_v60  ;;  %4659 = vmatpush3.bf16.msra.mxu1 %v5904_v2 }
 0x2ac   :  { %4660 = vmatprep.subr.bf16.mxu1 %v6421_v0  ;;  %4633 = vmatprep.subr.bf16.mxu0 %v5908_v37 }
 0x2af   :  { %4635 = vmatpush1.bf16.msra.mxu0 %v5911_v43  ;;  %4662 = vmatpush3.bf16.msra.mxu1 %v5914_v53 }
 0x2b0   :  { %4663 = vmatprep.subr.bf16.mxu1 %v6421_v0  ;;  %4637 = vmatprep.subr.bf16.mxu0 %v5918_v28 }
 0x2b3   :  { %4639 = vmatpush1.bf16.msra.mxu0 %v5921_v47  ;;  %4665 = vmatpush3.bf16.msra.mxu1 %v5923_v51 }
 0x2b4   :  { %4641 = vmatprep.subr.bf16.mxu0 %v5926_v20  ;;  %4666 = vmatprep.subr.bf16.mxu1 %v6421_v0 }
 0x2b7   :  { %4643 = vmatpush1.bf16.msra.mxu0 %v5930_v62  ;;  %4668 = vmatpush3.bf16.msra.mxu1 %v5932_v8 }
 0x2b8   :  { %4645 = vmatprep.subr.bf16.mxu0 %v5936_v39  ;;  %4669 = vmatprep.subr.bf16.mxu1 %v6421_v0 }
 0x2bb   :  { %4647 = vmatpush1.bf16.msra.mxu0 %v5940_v55  ;;  %4671 = vmatpush3.bf16.msra.mxu1 %v5942_v48 }
 0x2bc   :  { %4673 = vmatprep.subr.bf16.mxu0 %v5771_v23  ;;  %4704 = vmatprep.subr.bf16.mxu1 %v6421_v0 }
 0x351   :  { %v1185_v36 = vpop.f32.mrb[4].mxu0  ;;  %v1256_v10 = vpop.f32.mrb[10].mxu1 }
 0x352   :  { %v3365_v21 = vmul.f32 -1.442695, %v1185_v36  ;;  %v1187_v32 = vpop.f32.mrb[5].mxu0  ;;  %v3873_v44 = vpop.f32.mrb[11].mxu1  ;;  %v1274_v55 = vadd.f32 %v1256_v10, %v5691_v5  ;;  %v6450_v10 = vld [vmem:[#allocation15_spill] sm:$0xff] }
 0x353   :  { %v3366_v25 = vmul.f32 -1.442695, %v1187_v32 }
 0x354   :  { %5169 = vpow2.f32 %v3365_v21 }
 0x355   :  { %5171 = vpow2.f32 %v3366_v25 }
 0x35e   :  { %v5170_v54 = vpop.eup %5169 }
 0x35f   :  { %v1264_v13 = vadd.f32 1.0, %v5170_v54  ;;  %v5172_v26 = vpop.eup %5171 }
 0x360   :  { %v1271_v39 = vadd.f32 1.0, %v5172_v26 }
 0x361   :  { %5173 = vrcp.f32 %v1264_v13 }
 0x362   :  { %5175 = vrcp.f32 %v1271_v39  ;;  %v6447_v39 = vld [vmem:[#allocation20_spill] sm:$0xff] }
 0x36b   :  { %v5174_v48 = vpop.eup %5173 }
 0x36c   :  { %v1275_v8 = vmul.f32 %v5174_v48, %v1274_v55  ;;  %v5176_v23 = vpop.eup %5175  ;;  %v6448_v55 = vld [vmem:[#allocation21_spill] sm:$0xff]  ;;  %v6449_v48 = vld [vmem:[#allocation22_spill] sm:$0xff] }
 0x36d   :  { %v1278_v36 = vsub.f32 1.0, %v5176_v23  ;;  %v1280_v21 = vmul.f32 %v5176_v23, %v5780_v24 }
 0x36e   :  { %v1276_v0 = vadd.f32 %v1275_v8, %v5831_v41  ;;  %v1692_v41 = vld [vmem:[#allocation2 + $0x20] sm:$0xff]  ;;  %v6446_v8 = vld [vmem:[#allocation19_spill] sm:$0xff] }
 0x36f   :  { %vm1693_vm5 = vcmp.eq.s32.totalorder %v1692_v41, %v5504_v11 }
 0x370   :  { %5177 = vtanh.f32 %v1276_v0  ;;  %v6444_v0 = vmov 0.0|0.0  }
 0x371   :  { %v1474_v23 = vpop.f32.mrb[12].mxu1 }
 0x372   :  { %v3908_v24 = vpop.f32.mrb[13].mxu1 }
 0x37a   :  { %v5178_v62 = vpop.eup %5177 }
 0x37b   :  { %v1279_v44 = vmul.f32 %v5178_v62, %v1278_v36  ;;  %v6445_v62 = vld [vmem:[#allocation18_spill] sm:$0xff] }
 0x37d   :  { %v5953_v32 = vadd.f32 %v1280_v21, %v1279_v44 }
 0x37f   :  { %1283 = vst [vmem:[#allocation8 + $0x10] sm:$0xff] %v5953_v32  ;;  %1591 = vmatmul.mubr.f32.vlgmr.msra.gmra.mrb[6].mxu0 %v5953_v32  ;;  %3942 = vmatmul.mubr.f32.vlgmr.msra.gmra.mrb[14].mxu1 %v5953_v32 }
 0x380   :  { %4675 = vmatpush1.bf16.msra.mxu0 %v5776_v4  ;;  %4706 = vmatpush3.bf16.msra.mxu1 %v5778_v7 }
 0x381   :  { %4677 = vmatprep.subr.bf16.mxu0 %v5782_v30  ;;  %4707 = vmatprep.subr.bf16.mxu1 %v6444_v0 }
 0x382   :  { %1808 = vmatprep.mubr.f32.mxu0 %v6434_v38  ;;  %3976 = vmatprep.mubr.msk.f32.mxu1 %vm5357_vm0, %v6434_v38 }
 0x384   :  { %4679 = vmatpush1.bf16.msra.mxu0 %v5789_v18  ;;  %4709 = vmatpush3.bf16.msra.mxu1 %v5791_v19 }
 0x385   :  { %4681 = vmatprep.subr.bf16.mxu0 %v5795_v33  ;;  %4710 = vmatprep.subr.bf16.mxu1 %v6444_v0 }
 0x388   :  { %4683 = vmatpush1.bf16.msra.mxu0 %v5802_v58  ;;  %4712 = vmatpush3.bf16.msra.mxu1 %v5804_v61 }
 0x389   :  { %4685 = vmatprep.subr.bf16.mxu0 %v5808_v6  ;;  %4713 = vmatprep.subr.bf16.mxu1 %v6444_v0 }
 0x38c   :  { %4687 = vmatpush1.bf16.msra.mxu0 %v5812_v1  ;;  %4715 = vmatpush3.bf16.msra.mxu1 %v5814_v9 }
 0x38d   :  { %4689 = vmatprep.subr.bf16.mxu0 %v5818_v16  ;;  %4716 = vmatprep.subr.bf16.mxu1 %v6444_v0 }
 0x390   :  { %4691 = vmatpush1.bf16.msra.mxu0 %v5822_v34  ;;  %4718 = vmatpush3.bf16.msra.mxu1 %v5824_v35 }
 0x391   :  { %4693 = vmatprep.subr.bf16.mxu0 %v5833_v52  ;;  %4719 = vmatprep.subr.bf16.mxu1 %v6444_v0 }
 0x394   :  { %4695 = vmatpush1.bf16.msra.mxu0 %v5835_v63  ;;  %4721 = vmatpush3.bf16.msra.mxu1 %v5838_v14 }
 0x395   :  { %4697 = vmatprep.subr.bf16.mxu0 %v5842_v27  ;;  %4722 = vmatprep.subr.bf16.mxu1 %v6444_v0 }
 0x398   :  { %4699 = vmatpush1.bf16.msra.mxu0 %v5845_v45  ;;  %4724 = vmatpush3.bf16.msra.mxu1 %v5848_v56 }
 0x399   :  { %4701 = vmatprep.subr.bf16.mxu0 %v5852_v31  ;;  %4725 = vmatprep.subr.bf16.mxu1 %v6444_v0 }
 0x39c   :  { %4703 = vmatpush1.bf16.msra.mxu0 %v5855_v3  ;;  %4727 = vmatpush3.bf16.msra.mxu1 %v5858_v40 }
 0x39d   :  { %4729 = vmatprep.subr.bf16.mxu0 %v5862_v22  ;;  %4760 = vmatprep.subr.bf16.mxu1 %v6444_v0 }
 0x39f   :  { %3373 = vmatmul.mubr.msk.f32.vlgmr.msra.gmra.mrb[8].mxu0 %vm1693_vm5, %v6435_v15  ;;  %3977 = vmatmul.mubr.msk.f32.vlgmr.msra.gmra.mrb[16].mxu1 %vm1693_vm5, %v6435_v15 }
 0x3a0   :  { %4731 = vmatpush1.bf16.msra.mxu0 %v5865_v12  ;;  %4762 = vmatpush3.bf16.msra.mxu1 %v5869_v46 }
 0x3a1   :  { %4733 = vmatprep.subr.bf16.mxu0 %v5875_v29  ;;  %4763 = vmatprep.subr.bf16.mxu1 %v6444_v0 }
 0x3a2   :  { %1997 = vmatprep.mubr.f32.mxu0 %v6434_v38  ;;  %4011 = vmatprep.mubr.msk.f32.mxu1 %vm5357_vm0, %v6434_v38 }
 0x3a4   :  { %4735 = vmatpush1.bf16.msra.mxu0 %v5878_v50  ;;  %4765 = vmatpush3.bf16.msra.mxu1 %v5882_v59 }
 0x3a5   :  { %4737 = vmatprep.subr.bf16.mxu0 %v5888_v17  ;;  %4766 = vmatprep.subr.bf16.mxu1 %v6444_v0 }
 0x3a8   :  { %4739 = vmatpush1.bf16.msra.mxu0 %v5891_v42  ;;  %4768 = vmatpush3.bf16.msra.mxu1 %v5894_v57 }
 0x3a9   :  { %4741 = vmatprep.subr.bf16.mxu0 %v5898_v49  ;;  %4769 = vmatprep.subr.bf16.mxu1 %v6444_v0 }
 0x3ac   :  { %4743 = vmatpush1.bf16.msra.mxu0 %v5901_v60  ;;  %4771 = vmatpush3.bf16.msra.mxu1 %v5904_v2 }
 0x3ad   :  { %4745 = vmatprep.subr.bf16.mxu0 %v5908_v37  ;;  %4772 = vmatprep.subr.bf16.mxu1 %v6444_v0 }
 0x3b0   :  { %4747 = vmatpush1.bf16.msra.mxu0 %v5911_v43  ;;  %4774 = vmatpush3.bf16.msra.mxu1 %v5914_v53 }
 0x3b1   :  { %4749 = vmatprep.subr.bf16.mxu0 %v5918_v28  ;;  %4775 = vmatprep.subr.bf16.mxu1 %v6444_v0 }
 0x3b4   :  { %4751 = vmatpush1.bf16.msra.mxu0 %v5921_v47  ;;  %4777 = vmatpush3.bf16.msra.mxu1 %v5923_v51 }
 0x3b5   :  { %4753 = vmatprep.subr.bf16.mxu0 %v5926_v20  ;;  %4778 = vmatprep.subr.bf16.mxu1 %v6444_v0 }
 0x3b8   :  { %4755 = vmatpush1.bf16.msra.mxu0 %v6445_v62  ;;  %4780 = vmatpush3.bf16.msra.mxu1 %v6446_v8 }
 0x3b9   :  { %4757 = vmatprep.subr.bf16.mxu0 %v6447_v39  ;;  %4781 = vmatprep.subr.bf16.mxu1 %v6444_v0 }
 0x3bc   :  { %4759 = vmatpush1.bf16.msra.mxu0 %v6448_v55  ;;  %4783 = vmatpush3.bf16.msra.mxu1 %v6449_v48 }
 0x3bd   :  { %4785 = vmatprep.subr.bf16.mxu0 %v6450_v10  ;;  %4816 = vmatprep.subr.bf16.mxu1 %v6444_v0 }
 0x452   :  { %v1592_v25 = vpop.f32.mrb[6].mxu0  ;;  %v1663_v54 = vpop.f32.mrb[14].mxu1 }
 0x453   :  { %v3370_v13 = vmul.f32 -1.442695, %v1592_v25  ;;  %v1594_v26 = vpop.f32.mrb[7].mxu0  ;;  %v3943_v36 = vpop.f32.mrb[15].mxu1  ;;  %v1681_v55 = vadd.f32 %v1663_v54, %v5691_v5 }
 0x454   :  { %v3371_v44 = vmul.f32 -1.442695, %v1594_v26  ;;  %v2522_v36 = vld [vmem:[#allocation5 + $0x60] sm:$0xff] }
 0x455   :  { %5179 = vpow2.f32 %v3370_v13 }
 0x456   :  { %5181 = vpow2.f32 %v3371_v44 }
 0x45f   :  { %v5180_v21 = vpop.eup %5179 }
 0x460   :  { %v1671_v24 = vadd.f32 1.0, %v5180_v21  ;;  %v5182_v41 = vpop.eup %5181  ;;  %v2525_v21 = vld [vmem:[#allocation5 + $0x78] sm:$0xff] }
 0x461   :  { %v1678_v39 = vadd.f32 1.0, %v5182_v41  ;;  %v2527_v41 = vld [vmem:[#allocation5 + $0x88] sm:$0xff] }
 0x462   :  { %5183 = vrcp.f32 %v1671_v24  ;;  %v2524_v24 = vld [vmem:[#allocation5 + $0x70] sm:$0xff] }
 0x463   :  { %5185 = vrcp.f32 %v1678_v39  ;;  %v2523_v39 = vld [vmem:[#allocation5 + $0x68] sm:$0xff] }
 0x46c   :  { %v5184_v48 = vpop.eup %5183 }
 0x46d   :  { %v1682_v8 = vmul.f32 %v5184_v48, %v1681_v55  ;;  %v5186_v62 = vpop.eup %5185  ;;  %v2526_v55 = vld [vmem:[#allocation5 + $0x80] sm:$0xff] }
 0x46e   :  { %v1685_v20 = vsub.f32 1.0, %v5186_v62  ;;  %v1687_v13 = vmul.f32 %v5186_v62, %v5953_v32  ;;  %v2518_v62 = vld [vmem:[#allocation5 + $0x40] sm:$0xff]  ;;  %v6139_v44 = vpack.c.bf16 %v2526_v55, %v2523_v39 }
 0x46f   :  { %v1683_v10 = vadd.f32 %v1682_v8, %v1474_v23  ;;  %v2519_v23 = vld [vmem:[#allocation5 + $0x48] sm:$0xff]  ;;  %v2521_v8 = vld [vmem:[#allocation5 + $0x58] sm:$0xff]  ;;  %v2554_v39 = vld [vmem:[#allocation5 + $0x160] sm:$0xff] }
 0x470   :  { %v6135_v54 = vpack.c.bf16 %v2521_v8, %v2518_v62  ;;  %v2552_v62 = vld [vmem:[#allocation5 + $0x150] sm:$0xff]  ;;  %v2555_v8 = vld [vmem:[#allocation5 + $0x168] sm:$0xff] }
 0x471   :  { %5187 = vtanh.f32 %v1683_v10  ;;  %v2529_v10 = vld [vmem:[#allocation5 + $0x98] sm:$0xff]  ;;  %v6199_v55 = vpack.c.bf16 %v2555_v8, %v2552_v62  ;;  %v2721_v62 = vld [vmem:[#allocation7 + $0xb0] sm:$0xff] }
 0x472   :  { %v1881_v5 = vpop.f32.mrb[16].mxu1 }
 0x47b   :  { %v5188_v25 = vpop.eup %5187 }
 0x47c   :  { %v1686_v51 = vmul.f32 %v5188_v25, %v1685_v20  ;;  %v2532_v25 = vld [vmem:[#allocation5 + $0xb0] sm:$0xff] }
 0x47e   :  { %v6033_v26 = vadd.f32 %v1687_v13, %v1686_v51  ;;  %v2516_v51 = vld [vmem:[#allocation5 + $0x30] sm:$0xff]  ;;  %v6146_v13 = vpack.c.bf16 %v2525_v21, %v2522_v36  ;;  %v2557_v36 = vld [vmem:[#allocation5 + $0x178] sm:$0xff] }
 0x47f   :  { %v6133_v48 = vpack.c.bf16 %v2519_v23, %v2516_v51  ;;  %v2556_v51 = vld [vmem:[#allocation5 + $0x170] sm:$0xff]  ;;  %v6202_v21 = vpack.c.bf16 %v2557_v36, %v2554_v39  ;;  %v2720_v36 = vld [vmem:[#allocation7 + $0xa8] sm:$0xff] }
 0x480   :  { %1690 = vst [vmem:[#allocation8 + $0x18] sm:$0xff] %v6033_v26  ;;  %1998 = vmatmul.mubr.f32.vlgmr.msra.gmra.mrb[8].mxu0 %v6033_v26  ;;  %4012 = vmatmul.mubr.f32.vlgmr.msra.gmra.mrb[18].mxu1 %v6033_v26  ;;  %v2717_v39 = vld [vmem:[#allocation7 + $0x90] sm:$0xff] }
 0x481   :  { %4787 = vmatpush1.bf16.msra.mxu0 %v5776_v4  ;;  %4818 = vmatpush3.bf16.msra.mxu1 %v5778_v7  ;;  %v3978_v4 = vpop.f32.mrb[17].mxu1  ;;  %v2099_v7 = vld [vmem:[#allocation2 + $0x28] sm:$0xff] }
 0x482   :  { %4789 = vmatprep.subr.bf16.mxu0 %v5782_v30  ;;  %4819 = vmatprep.subr.bf16.mxu1 %v6444_v0  ;;  %vm2100_vm6 = vcmp.eq.s32.totalorder %v2099_v7, %v5504_v11  ;;  %v6451_v30 = vld [vmem:[#allocation16_spill] sm:$0xff]  ;;  %v6152_v4 = vpack.c.bf16 %v2532_v25, %v2529_v10  ;;  %v2531_v7 = vld [vmem:[#allocation5 + $0xa8] sm:$0xff]  ;;  %v2699_v25 = vld [vmem:[#allocation7] sm:$0xff] }
 0x483   :  { %2215 = vmatprep.mubr.f32.mxu0 %v6434_v38  ;;  %4046 = vmatprep.mubr.msk.f32.mxu1 %vm5357_vm0, %v6434_v38 }
 0x485   :  { %4791 = vmatpush1.bf16.msra.mxu0 %v5789_v18  ;;  %4821 = vmatpush3.bf16.msra.mxu1 %v5791_v19  ;;  %v6452_v18 = vld [vmem:[#allocation17_spill] sm:$0xff]  ;;  %v6453_v19 = vld [vmem:[#allocation18_spill] sm:$0xff] }
 0x486   :  { %4793 = vmatprep.subr.bf16.mxu0 %v5795_v33  ;;  %4822 = vmatprep.subr.bf16.mxu1 %v6444_v0  ;;  %v6454_v33 = vld [vmem:[#allocation19_spill] sm:$0xff] }
 0x489   :  { %4795 = vmatpush1.bf16.msra.mxu0 %v5802_v58  ;;  %4824 = vmatpush3.bf16.msra.mxu1 %v5804_v61  ;;  %v6455_v58 = vld [vmem:[#allocation20_spill] sm:$0xff]  ;;  %v6456_v61 = vld [vmem:[#allocation21_spill] sm:$0xff] }
 0x48a   :  { %4797 = vmatprep.subr.bf16.mxu0 %v5808_v6  ;;  %4825 = vmatprep.subr.bf16.mxu1 %v6444_v0  ;;  %v6457_v6 = vld [vmem:[#allocation22_spill] sm:$0xff] }
 0x48d   :  { %4799 = vmatpush1.bf16.msra.mxu0 %v5812_v1  ;;  %4827 = vmatpush3.bf16.msra.mxu1 %v5814_v9  ;;  %v2511_v1 = vld [vmem:[#allocation5 + $0x8] sm:$0xff]  ;;  %v2514_v9 = vld [vmem:[#allocation5 + $0x20] sm:$0xff] }
 0x48e   :  { %4801 = vmatprep.subr.bf16.mxu0 %v5818_v16  ;;  %4828 = vmatprep.subr.bf16.mxu1 %v6444_v0  ;;  %v6110_v16 = vpack.c.bf16 %v2514_v9, %v2511_v1  ;;  %v2537_v9 = vld [vmem:[#allocation5 + $0xd8] sm:$0xff] }
 0x491   :  { %4803 = vmatpush1.bf16.msra.mxu0 %v5822_v34  ;;  %4830 = vmatpush3.bf16.msra.mxu1 %v5824_v35 }
 0x492   :  { %4805 = vmatprep.subr.bf16.mxu0 %v5833_v52  ;;  %4831 = vmatprep.subr.bf16.mxu1 %v6444_v0 }
 0x495   :  { %4807 = vmatpush1.bf16.msra.mxu0 %v5835_v63  ;;  %4833 = vmatpush3.bf16.msra.mxu1 %v5838_v14 }
 0x496   :  { %4809 = vmatprep.subr.bf16.mxu0 %v5842_v27  ;;  %4834 = vmatprep.subr.bf16.mxu1 %v6444_v0 }
 0x499   :  { %4811 = vmatpush1.bf16.msra.mxu0 %v5845_v45  ;;  %4836 = vmatpush3.bf16.msra.mxu1 %v5848_v56 }
 0x49a   :  { %4813 = vmatprep.subr.bf16.mxu0 %v5852_v31  ;;  %4837 = vmatprep.subr.bf16.mxu1 %v6444_v0 }
 0x49d   :  { %4815 = vmatpush1.bf16.msra.mxu0 %v5855_v3  ;;  %4839 = vmatpush3.bf16.msra.mxu1 %v5858_v40  ;;  %v6116_v40 = vld [vmem:[%s6406_s3] sm:$0xff]  ;;  %s5359_s3 = smov [#allocation8]  }
 0x49e   :  { %4841 = vmatprep.subr.bf16.mxu0 %v5862_v22  ;;  %4872 = vmatprep.subr.bf16.mxu1 %v6444_v0  ;;  %s3325_s9 = sshll.u32 %s5359_s3, 4  ;;  %s3326_s9 = int_to_ptr.vmem [resolvable:$true] %s3325_s9 }
 0x49f   :  { %s5296_s12 = scalar_lea.vmem %s3326_s9, 1024  ;;  %p5301_p11 = scmp.lt.s32.totalorder %s3326_s9, %s3326_s9 }
 0x4a0   :  { %3378 = vmatmul.mubr.msk.f32.vlgmr.msra.gmra.mrb[10].mxu0 %vm2100_vm6, %v6435_v15  ;;  %4047 = vmatmul.mubr.msk.f32.vlgmr.msra.gmra.mrb[20].mxu1 %vm2100_vm6, %v6435_v15  ;;  %p5297_p10 = scmp.ne.s32.totalorder %s3326_s9, %s5296_s12  ;;  %p5302_p12 = scmp.lt.s32.totalorder %s5296_s12, %s5296_s12 }
 0x4a1   :  { %4843 = vmatpush1.bf16.msra.mxu0 %v5865_v12  ;;  %4874 = vmatpush3.bf16.msra.mxu1 %v5869_v46 }
 0x4a2   :  { %4845 = vmatprep.subr.bf16.mxu0 %v5875_v29  ;;  %4875 = vmatprep.subr.bf16.mxu1 %v6444_v0  ;;  %p5303_p13 = por %p5302_p12, %p5301_p11 }
 0x4a3   :  { %2404 = vmatprep.mubr.f32.mxu0 %v6434_v38  ;;  %4081 = vmatprep.mubr.msk.f32.mxu1 %vm5357_vm0, %v6434_v38 }
 0x4a4   :  { %p5304_p0 = pnand %p5303_p13, %p5297_p10 }
 0x4a5   :  { %4847 = vmatpush1.bf16.msra.mxu0 %v5878_v50  ;;  %4877 = vmatpush3.bf16.msra.mxu1 %v5882_v59  ;;  %v2510_v59 = vld [vmem:[#allocation5] sm:$0xff] }
 0x4a6   :  { %4849 = vmatprep.subr.bf16.mxu0 %v5888_v17  ;;  %4878 = vmatprep.subr.bf16.mxu1 %v6444_v0 }
 0x4a9   :  { %4851 = vmatpush1.bf16.msra.mxu0 %v5891_v42  ;;  %4880 = vmatpush3.bf16.msra.mxu1 %v5894_v57  ;;  %v2513_v42 = vld [vmem:[#allocation5 + $0x18] sm:$0xff]  ;;  %v2512_v57 = vld [vmem:[#allocation5 + $0x10] sm:$0xff] }
 0x4aa   :  { %4853 = vmatprep.subr.bf16.mxu0 %v5898_v49  ;;  %4881 = vmatprep.subr.bf16.mxu1 %v6444_v0  ;;  %v2515_v49 = vld [vmem:[#allocation5 + $0x28] sm:$0xff] }
 0x4ad   :  { %4855 = vmatpush1.bf16.msra.mxu0 %v5901_v60  ;;  %4883 = vmatpush3.bf16.msra.mxu1 %v5904_v2  ;;  %v2517_v2 = vld [vmem:[#allocation5 + $0x38] sm:$0xff] }
 0x4ae   :  { %4857 = vmatprep.subr.bf16.mxu0 %v5908_v37  ;;  %4884 = vmatprep.subr.bf16.mxu1 %v6444_v0  ;;  %v2520_v37 = vld [vmem:[#allocation5 + $0x50] sm:$0xff] }
 0x4af   :  { %v6126_v32 = vpack.c.bf16 %v2520_v37, %v2517_v2  ;;  %v2551_v37 = vld [vmem:[#allocation5 + $0x148] sm:$0xff] }
 0x4b1   :  { %4859 = vmatpush1.bf16.msra.mxu0 %v5911_v43  ;;  %4886 = vmatpush3.bf16.msra.mxu1 %v5914_v53 }
 0x4b2   :  { %4861 = vmatprep.subr.bf16.mxu0 %v5918_v28  ;;  %4887 = vmatprep.subr.bf16.mxu1 %v6444_v0  ;;  %v6120_v28 = vpack.c.bf16 %v2513_v42, %v2510_v59  ;;  %v2547_v59 = vld [vmem:[#allocation5 + $0x128] sm:$0xff] }
 0x4b5   :  { %4863 = vmatpush1.bf16.msra.mxu0 %v5921_v47  ;;  %4889 = vmatpush3.bf16.msra.mxu1 %v6451_v30  ;;  %v6122_v47 = vpack.c.bf16 %v2515_v49, %v2512_v57  ;;  %v2530_v30 = vld [vmem:[#allocation5 + $0xa0] sm:$0xff]  ;;  %v2549_v49 = vld [vmem:[#allocation5 + $0x138] sm:$0xff] }
 0x4b6   :  { %4865 = vmatprep.subr.bf16.mxu0 %v6452_v18  ;;  %4890 = vmatprep.subr.bf16.mxu1 %v6444_v0  ;;  %v2533_v18 = vld [vmem:[#allocation5 + $0xb8] sm:$0xff]  ;;  %v2546_v57 = vld [vmem:[#allocation5 + $0x120] sm:$0xff] }
 0x4b7   :  { %v6189_v2 = vpack.c.bf16 %v2549_v49, %v2546_v57  ;;  %v2714_v57 = vld [vmem:[#allocation7 + $0x78] sm:$0xff]  ;;  %v2713_v49 = vld [vmem:[#allocation7 + $0x70] sm:$0xff] }
 0x4b9   :  { %4867 = vmatpush1.bf16.msra.mxu0 %v6453_v19  ;;  %4892 = vmatpush3.bf16.msra.mxu1 %v6454_v33  ;;  %v2535_v19 = vld [vmem:[#allocation5 + $0xc8] sm:$0xff]  ;;  %v2538_v33 = vld [vmem:[#allocation5 + $0xe0] sm:$0xff] }
 0x4ba   :  { %4869 = vmatprep.subr.bf16.mxu0 %v6455_v58  ;;  %4893 = vmatprep.subr.bf16.mxu1 %v6444_v0  ;;  %v6162_v1 = vpack.c.bf16 %v2538_v33, %v2535_v19  ;;  %v2704_v19 = vld [vmem:[#allocation7 + $0x28] sm:$0xff] }
 0x4bd   :  { %4871 = vmatpush1.bf16.msra.mxu0 %v6456_v61  ;;  %4895 = vmatpush3.bf16.msra.mxu1 %v6457_v6  ;;  %v6158_v61 = vpack.c.bf16 %v2533_v18, %v2530_v30  ;;  %v2534_v6 = vld [vmem:[#allocation5 + $0xc0] sm:$0xff]  ;;  %v2506_v30 = vld [vmem:[#allocation2 + $0x30] sm:$0xff] }
 0x4be   :  { %4928 = vmatprep.subr.bf16.mxu1 %v6444_v0  ;;  %4897 = vmatprep.subr.bf16.mxu0 %v6110_v16  ;;  %vm2507_vm7 = vcmp.eq.s32.totalorder %v2506_v30, %v5504_v11  ;;  %v2727_v30 = vld [vmem:[#allocation7 + $0xe0] sm:$0xff] }
 0x553   :  { %v1999_v34 = vpop.f32.mrb[8].mxu0  ;;  %v2070_v35 = vpop.f32.mrb[18].mxu1 }
 0x554   :  { %v3375_v52 = vmul.f32 -1.442695, %v1999_v34  ;;  %v2001_v63 = vpop.f32.mrb[9].mxu0  ;;  %v4013_v14 = vpop.f32.mrb[19].mxu1  ;;  %v2088_v22 = vadd.f32 %v6116_v40, %v2070_v35  ;;  %v2536_v34 = vld [vmem:[#allocation5 + $0xd0] sm:$0xff]  ;;  %v2539_v35 = vld [vmem:[#allocation5 + $0xe8] sm:$0xff] }
 0x555   :  { %v3376_v27 = vmul.f32 -1.442695, %v2001_v63  ;;  %v6168_v63 = vpack.c.bf16 %v2539_v35, %v2536_v34  ;;  %v2705_v35 = vld [vmem:[#allocation7 + $0x30] sm:$0xff] }
 0x556   :  { %5189 = vpow2.f32 %v3375_v52  ;;  %v6166_v52 = vpack.c.bf16 %v2537_v9, %v2534_v6  ;;  %v2706_v6 = vld [vmem:[#allocation7 + $0x38] sm:$0xff]  ;;  %v2709_v9 = vld [vmem:[#allocation7 + $0x50] sm:$0xff] }
 0x557   :  { %5191 = vpow2.f32 %v3376_v27  ;;  %v6219_v34 = vpack.c.bf16 %v2709_v9, %v2706_v6  ;;  %v2723_v6 = vld [vmem:[#allocation7 + $0xc0] sm:$0xff]  ;;  %v2726_v9 = vld [vmem:[#allocation7 + $0xd8] sm:$0xff] }
 0x560   :  { %v5190_v45 = vpop.eup %5189 }
 0x561   :  { %v2078_v56 = vadd.f32 1.0, %v5190_v45  ;;  %v5192_v31 = vpop.eup %5191  ;;  %v2541_v45 = vld [vmem:[#allocation5 + $0xf8] sm:$0xff] }
 0x562   :  { %v2085_v3 = vadd.f32 1.0, %v5192_v31 }
 0x563   :  { %5193 = vrcp.f32 %v2078_v56  ;;  %v2544_v56 = vld [vmem:[#allocation5 + $0x110] sm:$0xff] }
 0x564   :  { %5195 = vrcp.f32 %v2085_v3  ;;  %v6177_v31 = vpack.c.bf16 %v2544_v56, %v2541_v45  ;;  %v2540_v3 = vld [vmem:[#allocation5 + $0xf0] sm:$0xff]  ;;  %v2707_v45 = vld [vmem:[#allocation7 + $0x40] sm:$0xff] }
 0x56d   :  { %v5194_v12 = vpop.eup %5193 }
 0x56e   :  { %v2089_v46 = vmul.f32 %v5194_v12, %v2088_v22  ;;  %v5196_v50 = vpop.eup %5195  ;;  %v2543_v22 = vld [vmem:[#allocation5 + $0x108] sm:$0xff]  ;;  %v2542_v12 = vld [vmem:[#allocation5 + $0x100] sm:$0xff] }
 0x56f   :  { %v2092_v17 = vsub.f32 1.0, %v5196_v50  ;;  %v2094_v53 = vmul.f32 %v5196_v50, %v6033_v26  ;;  %v6148_v26 = vpack.c.bf16 %v2527_v41, %v2524_v24  ;;  %v2700_v24 = vld [vmem:[#allocation7 + $0x8] sm:$0xff]  ;;  %v2703_v41 = vld [vmem:[#allocation7 + $0x20] sm:$0xff] }
 0x570   :  { %v2090_v29 = vadd.f32 %v2089_v46, %v1881_v5  ;;  %v2528_v5 = vld [vmem:[#allocation5 + $0x90] sm:$0xff]  ;;  %v6179_v46 = vpack.c.bf16 %v2543_v22, %v2540_v3  ;;  %v6206_v10 = vpack.c.bf16 %v2703_v41, %v2700_v24  ;;  %v2710_v3 = vld [vmem:[#allocation7 + $0x58] sm:$0xff]  ;;  %v2719_v24 = vld [vmem:[#allocation7 + $0xa0] sm:$0xff]  ;;  %v6245_v41 = vpack.c.bf16 %v2720_v36, %v2717_v39 }
 0x571   :  { %v6156_v58 = vpack.c.bf16 %v2531_v7, %v2528_v5  ;;  %v2702_v5 = vld [vmem:[#allocation7 + $0x18] sm:$0xff]  ;;  %v2701_v7 = vld [vmem:[#allocation7 + $0x10] sm:$0xff]  ;;  %v6226_v22 = vpack.c.bf16 %v2710_v3, %v2707_v45  ;;  %v2728_v45 = vld [vmem:[#allocation7 + $0xe8] sm:$0xff] }
 0x572   :  { %5197 = vtanh.f32 %v2090_v29  ;;  %v2545_v29 = vld [vmem:[#allocation5 + $0x118] sm:$0xff]  ;;  %v6209_v18 = vpack.c.bf16 %v2702_v5, %v2699_v25  ;;  %v6213_v33 = vpack.c.bf16 %v2704_v19, %v2701_v7  ;;  %v2724_v7 = vld [vmem:[#allocation7 + $0xc8] sm:$0xff] }
 0x573   :  { %v6175_v14 = vpop.f32.mrb[20].mxu1  ;;  %v6182_v50 = vpack.c.bf16 %v2545_v29, %v2542_v12  ;;  %v2712_v12 = vld [vmem:[#allocation7 + $0x68] sm:$0xff]  ;;  %v2715_v29 = vld [vmem:[#allocation7 + $0x80] sm:$0xff]  ;;  %v2722_v25 = vld [vmem:[#allocation7 + $0xb8] sm:$0xff]  ;;  %v6252_v19 = vpack.c.bf16 %v2727_v30, %v2724_v7 }
 0x574   :  { %v4048_v27 = vpop.f32.mrb[21].mxu1  ;;  %v6248_v5 = vpack.c.bf16 %v2722_v25, %v2719_v24  ;;  %v2736_v36 = vld [vmem:[#allocation7 + $0x128] sm:$0xff]  ;;  %v2739_v24 = vld [vmem:[#allocation7 + $0x140] sm:$0xff]  ;;  %v2738_v30 = vld [vmem:[#allocation7 + $0x138] sm:$0xff] }
 0x575   :  { %v2708_v27 = vld [vmem:[#allocation7 + $0x48] sm:$0xff]  ;;  %v2735_v25 = vld [vmem:[#allocation7 + $0x120] sm:$0xff]  ;;  %v6270_v7 = vpack.c.bf16 %v2739_v24, %v2736_v36  ;;  %v2746_v36 = vld [vmem:[#allocation7 + $0x178] sm:$0xff] }
 0x576   :  { %v6222_v56 = vpack.c.bf16 %v2708_v27, %v2705_v35  ;;  %v2725_v35 = vld [vmem:[#allocation7 + $0xd0] sm:$0xff]  ;;  %v6255_v27 = vpack.c.bf16 %v2726_v9, %v2723_v6  ;;  %v2740_v9 = vld [vmem:[#allocation7 + $0x148] sm:$0xff] }
 0x577   :  { %v6258_v3 = vpack.c.bf16 %v2728_v45, %v2725_v35  ;;  %6458 = vst [vmem:[#allocation15_spill] sm:$0xff] %v6270_v7  ;;  %v2737_v6 = vld [vmem:[#allocation7 + $0x130] sm:$0xff]  ;;  %v2742_v35 = vld [vmem:[#allocation7 + $0x158] sm:$0xff] }
 0x578   :  { %v2745_v45 = vld [vmem:[#allocation7 + $0x170] sm:$0xff] }
 0x57c   :  { %v5198_v60 = vpop.eup %5197 }
 0x57d   :  { %v2093_v43 = vmul.f32 %v5198_v60, %v2092_v17  ;;  %v2550_v17 = vld [vmem:[#allocation5 + $0x140] sm:$0xff]  ;;  %v2548_v60 = vld [vmem:[#allocation5 + $0x130] sm:$0xff] }
 0x57e   :  { %v6186_v42 = vpack.c.bf16 %v2550_v17, %v2547_v59  ;;  %v6232_v59 = vpack.c.bf16 %v2715_v29, %v2712_v12  ;;  %v2711_v17 = vld [vmem:[#allocation7 + $0x60] sm:$0xff]  ;;  %v2730_v12 = vld [vmem:[#allocation7 + $0xf8] sm:$0xff]  ;;  %v2733_v29 = vld [vmem:[#allocation7 + $0x110] sm:$0xff] }
 0x57f   :  { %v6124_v20 = vadd.f32 %v2094_v53, %v2093_v43  ;;  %v6192_v43 = vpack.c.bf16 %v2551_v37, %v2548_v60  ;;  %v2553_v53 = vld [vmem:[#allocation5 + $0x158] sm:$0xff]  ;;  %v6235_v60 = vpack.c.bf16 %v2714_v57, %v2711_v17  ;;  %v2716_v37 = vld [vmem:[#allocation7 + $0x88] sm:$0xff]  ;;  %v2729_v17 = vld [vmem:[#allocation7 + $0xf0] sm:$0xff]  ;;  %v6262_v57 = vpack.c.bf16 %v2733_v29, %v2730_v12 }
 0x580   :  { %v6196_v23 = vpack.c.bf16 %v2556_v51, %v2553_v53  ;;  %v6238_v53 = vpack.c.bf16 %v2716_v37, %v2713_v49  ;;  %v2718_v51 = vld [vmem:[#allocation7 + $0x98] sm:$0xff]  ;;  %v2732_v49 = vld [vmem:[#allocation7 + $0x108] sm:$0xff]  ;;  %v2731_v37 = vld [vmem:[#allocation7 + $0x100] sm:$0xff]  ;;  %v6274_v12 = vpack.c.bf16 %v2738_v30, %v2735_v25  ;;  %v6276_v29 = vpack.c.bf16 %v2740_v9, %v2737_v6 }
 0x581   :  { %2097 = vst [vmem:[#allocation8 + $0x20] sm:$0xff] %v6124_v20  ;;  %2405 = vmatmul.mubr.f32.vlgmr.msra.gmra.mrb[10].mxu0 %v6124_v20  ;;  %4082 = vmatmul.mubr.f32.vlgmr.msra.gmra.mrb[22].mxu1 %v6124_v20  ;;  %v6242_v8 = vpack.c.bf16 %v2721_v62, %v2718_v51  ;;  %v2734_v51 = vld [vmem:[#allocation7 + $0x118] sm:$0xff]  ;;  %v6265_v62 = vpack.c.bf16 %v2732_v49, %v2729_v17  ;;  %v2741_v17 = vld [vmem:[#allocation7 + $0x150] sm:$0xff] }
 0x582   :  { %4899 = vmatpush1.bf16.msra.mxu0 %v6120_v28  ;;  %4930 = vmatpush3.bf16.msra.mxu1 %v6122_v47  ;;  %v6267_v39 = vpack.c.bf16 %v2734_v51, %v2731_v37  ;;  %6459 = vst [vmem:[#allocation16_spill] sm:$0xff] %v6274_v12  ;;  %6460 = vst [vmem:[#allocation17_spill] sm:$0xff] %v6276_v29  ;;  %v6280_v49 = vpack.c.bf16 %v2745_v45, %v2742_v35  ;;  %v2744_v37 = vld [vmem:[#allocation7 + $0x168] sm:$0xff]  ;;  %v2743_v51 = vld [vmem:[#allocation7 + $0x160] sm:$0xff] }
 0x583   :  { %4901 = vmatprep.subr.bf16.mxu0 %v6126_v32  ;;  %4931 = vmatprep.subr.bf16.mxu1 %v6444_v0  ;;  %v6284_v24 = vpack.c.bf16 %v2744_v37, %v2741_v17  ;;  %v6286_v25 = vpack.c.bf16 %v2746_v36, %v2743_v51 }
 0x584   :  { %2622 = vmatprep.mubr.f32.mxu0 %v6434_v38  ;;  %4116 = vmatprep.mubr.msk.f32.mxu1 %vm5357_vm0, %v6434_v38  ;;  %6461 = vst [vmem:[#allocation18_spill] sm:$0xff] %v6280_v49 }
 0x585   :  { %6462 = vst [vmem:[#allocation19_spill] sm:$0xff] %v6284_v24  ;;  %6463 = vst [vmem:[#allocation20_spill] sm:$0xff] %v6286_v25 }
 0x586   :  { %4903 = vmatpush1.bf16.msra.mxu0 %v6133_v48  ;;  %4933 = vmatpush3.bf16.msra.mxu1 %v6135_v54 }
 0x587   :  { %4905 = vmatprep.subr.bf16.mxu0 %v6139_v44  ;;  %4934 = vmatprep.subr.bf16.mxu1 %v6444_v0 }
 0x58a   :  { %4907 = vmatpush1.bf16.msra.mxu0 %v6146_v13  ;;  %4936 = vmatpush3.bf16.msra.mxu1 %v6148_v26 }
 0x58b   :  { %4909 = vmatprep.subr.bf16.mxu0 %v6152_v4  ;;  %4937 = vmatprep.subr.bf16.mxu1 %v6444_v0 }
 0x58e   :  { %4911 = vmatpush1.bf16.msra.mxu0 %v6156_v58  ;;  %4939 = vmatpush3.bf16.msra.mxu1 %v6158_v61 }
 0x58f   :  { %4913 = vmatprep.subr.bf16.mxu0 %v6162_v1  ;;  %4940 = vmatprep.subr.bf16.mxu1 %v6444_v0 }
 0x592   :  { %4915 = vmatpush1.bf16.msra.mxu0 %v6166_v52  ;;  %4942 = vmatpush3.bf16.msra.mxu1 %v6168_v63 }
 0x593   :  { %4943 = vmatprep.subr.bf16.mxu1 %v6444_v0  ;;  %4917 = vmatprep.subr.bf16.mxu0 %v6177_v31 }
 0x596   :  { %4919 = vmatpush1.bf16.msra.mxu0 %v6179_v46  ;;  %4945 = vmatpush3.bf16.msra.mxu1 %v6182_v50 }
 0x597   :  { %4946 = vmatprep.subr.bf16.mxu1 %v6444_v0  ;;  %4921 = vmatprep.subr.bf16.mxu0 %v6186_v42 }
 0x59a   :  { %4923 = vmatpush1.bf16.msra.mxu0 %v6189_v2  ;;  %4948 = vmatpush3.bf16.msra.mxu1 %v6192_v43 }
 0x59b   :  { %4949 = vmatprep.subr.bf16.mxu1 %v6444_v0  ;;  %4925 = vmatprep.subr.bf16.mxu0 %v6196_v23 }
 0x59e   :  { %4927 = vmatpush1.bf16.msra.mxu0 %v6199_v55  ;;  %4951 = vmatpush3.bf16.msra.mxu1 %v6202_v21 }
 0x59f   :  { %4984 = vmatprep.subr.bf16.mxu1 %v6444_v0  ;;  %4953 = vmatprep.subr.bf16.mxu0 %v6206_v10 }
 0x5a1   :  { %3383 = vmatmul.mubr.msk.f32.vlgmr.msra.gmra.mrb[12].mxu0 %vm2507_vm7, %v6435_v15  ;;  %4117 = vmatmul.mubr.msk.f32.vlgmr.msra.gmra.mrb[24].mxu1 %vm2507_vm7, %v6435_v15 }
 0x5a2   :  { %4955 = vmatpush1.bf16.msra.mxu0 %v6209_v18  ;;  %4986 = vmatpush3.bf16.msra.mxu1 %v6213_v33 }
 0x5a3   :  { %4987 = vmatprep.subr.bf16.mxu1 %v6444_v0  ;;  %2811 = vmatprep.mubr.f32.mxu0 %v6434_v38 }
 0x5a4   :  { %4957 = vmatprep.subr.bf16.mxu0 %v6219_v34  ;;  %4151 = vmatprep.mubr.msk.f32.mxu1 %vm5357_vm0, %v6434_v38 }
 0x5a6   :  { %4959 = vmatpush1.bf16.msra.mxu0 %v6222_v56  ;;  %4989 = vmatpush3.bf16.msra.mxu1 %v6226_v22 }
 0x5a7   :  { %4990 = vmatprep.subr.bf16.mxu1 %v6444_v0  ;;  %4961 = vmatprep.subr.bf16.mxu0 %v6232_v59 }
 0x5aa   :  { %4963 = vmatpush1.bf16.msra.mxu0 %v6235_v60  ;;  %4992 = vmatpush3.bf16.msra.mxu1 %v6238_v53 }
 0x5ab   :  { %4993 = vmatprep.subr.bf16.mxu1 %v6444_v0  ;;  %4965 = vmatprep.subr.bf16.mxu0 %v6242_v8 }
 0x5ae   :  { %4967 = vmatpush1.bf16.msra.mxu0 %v6245_v41  ;;  %4995 = vmatpush3.bf16.msra.mxu1 %v6248_v5 }
 0x5af   :  { %4996 = vmatprep.subr.bf16.mxu1 %v6444_v0  ;;  %4969 = vmatprep.subr.bf16.mxu0 %v6252_v19 }
 0x5b2   :  { %4971 = vmatpush1.bf16.msra.mxu0 %v6255_v27  ;;  %4998 = vmatpush3.bf16.msra.mxu1 %v6258_v3 }
 0x5b3   :  { %4999 = vmatprep.subr.bf16.mxu1 %v6444_v0  ;;  %4973 = vmatprep.subr.bf16.mxu0 %v6262_v57 }
 0x5b6   :  { %4975 = vmatpush1.bf16.msra.mxu0 %v6265_v62  ;;  %5001 = vmatpush3.bf16.msra.mxu1 %v6267_v39 }
 0x5b7   :  { %4977 = vmatprep.subr.bf16.mxu0 %v6270_v7  ;;  %5002 = vmatprep.subr.bf16.mxu1 %v6444_v0 }
 0x5ba   :  { %4979 = vmatpush1.bf16.msra.mxu0 %v6274_v12  ;;  %5004 = vmatpush3.bf16.msra.mxu1 %v6276_v29 }
 0x5bb   :  { %4981 = vmatprep.subr.bf16.mxu0 %v6280_v49  ;;  %5005 = vmatprep.subr.bf16.mxu1 %v6444_v0 }
 0x5be   :  { %4983 = vmatpush1.bf16.msra.mxu0 %v6284_v24  ;;  %5007 = vmatpush3.bf16.msra.mxu1 %v6286_v25 }
 0x5bf   :  { %5009 = vmatprep.subr.bf16.mxu0 %v6110_v16  ;;  %5040 = vmatprep.subr.bf16.mxu1 %v6444_v0 }
 0x654   :  { %v2406_v30 = vpop.f32.mrb[10].mxu0  ;;  %v2477_v6 = vpop.f32.mrb[22].mxu1 }
 0x655   :  { %v3380_v9 = vmul.f32 -1.442695, %v2406_v30  ;;  %v2408_v35 = vpop.f32.mrb[11].mxu0  ;;  %v4083_v45 = vpop.f32.mrb[23].mxu1  ;;  %v2495_v24 = vadd.f32 %v6116_v40, %v2477_v6 }
 0x656   :  { %v3381_v17 = vmul.f32 -1.442695, %v2408_v35 }
 0x657   :  { %5199 = vpow2.f32 %v3380_v9 }
 0x658   :  { %5201 = vpow2.f32 %v3381_v17 }
 0x661   :  { %v5200_v37 = vpop.eup %5199 }
 0x662   :  { %v2485_v51 = vadd.f32 1.0, %v5200_v37  ;;  %v5202_v36 = vpop.eup %5201 }
 0x663   :  { %v2492_v49 = vadd.f32 1.0, %v5202_v36 }
 0x664   :  { %5203 = vrcp.f32 %v2485_v51 }
 0x665   :  { %5205 = vrcp.f32 %v2492_v49 }
 0x66e   :  { %v5204_v25 = vpop.eup %5203 }
 0x66f   :  { %v2496_v29 = vmul.f32 %v5204_v25, %v2495_v24  ;;  %v5206_v12 = vpop.eup %5205 }
 0x670   :  { %v2499_v30 = vsub.f32 1.0, %v5206_v12  ;;  %v2501_v9 = vmul.f32 %v5206_v12, %v6124_v20  ;;  %v2913_v20 = vld [vmem:[#allocation2 + $0x38] sm:$0xff] }
 0x671   :  { %v2497_v16 = vadd.f32 %v2496_v29, %v6175_v14  ;;  %vm2914_vm8 = vcmp.eq.s32.totalorder %v2913_v20, %v5504_v11  ;;  %v6464_v11 = vld [vmem:[#allocation15_spill] sm:$0xff] }
 0x673   :  { %5207 = vtanh.f32 %v2497_v16 }
 0x67d   :  { %v5208_v7 = vpop.eup %5207 }
 0x67e   :  { %v2500_v45 = vmul.f32 %v5208_v7, %v2499_v30 }
 0x680   :  { %v6297_v35 = vadd.f32 %v2501_v9, %v2500_v45 }
 0x682   :  { %2504 = vst [vmem:[#allocation8 + $0x28] sm:$0xff] %v6297_v35  ;;  %2812 = vmatmul.mubr.f32.vlgmr.msra.gmra.mrb[12].mxu0 %v6297_v35  ;;  %4152 = vmatmul.mubr.f32.vlgmr.msra.gmra.mrb[26].mxu1 %v6297_v35 }
 0x683   :  { %5011 = vmatpush1.bf16.msra.mxu0 %v6120_v28  ;;  %5042 = vmatpush3.bf16.msra.mxu1 %v6122_v47  ;;  %v2695_v28 = vpop.f32.mrb[24].mxu1 }
 0x684   :  { %5013 = vmatprep.subr.bf16.mxu0 %v6126_v32  ;;  %5043 = vmatprep.subr.bf16.mxu1 %v6444_v0  ;;  %v4118_v47 = vpop.f32.mrb[25].mxu1  ;;  %v6467_v32 = vld [vmem:[#allocation18_spill] sm:$0xff] }
 0x685   :  { %3029 = vmatprep.mubr.f32.mxu0 %v6434_v38  ;;  %4186 = vmatprep.mubr.msk.f32.mxu1 %vm5357_vm0, %v6434_v38 }
 0x687   :  { %5015 = vmatpush1.bf16.msra.mxu0 %v6133_v48  ;;  %5045 = vmatpush3.bf16.msra.mxu1 %v6135_v54  ;;  %v6468_v48 = vld [vmem:[#allocation19_spill] sm:$0xff]  ;;  %v6469_v54 = vld [vmem:[#allocation20_spill] sm:$0xff] }
 0x688   :  { %5017 = vmatprep.subr.bf16.mxu0 %v6139_v44  ;;  %5046 = vmatprep.subr.bf16.mxu1 %v6444_v0 }
 0x68b   :  { %5019 = vmatpush1.bf16.msra.mxu0 %v6146_v13  ;;  %5048 = vmatpush3.bf16.msra.mxu1 %v6148_v26 }
 0x68c   :  { %5021 = vmatprep.subr.bf16.mxu0 %v6152_v4  ;;  %5049 = vmatprep.subr.bf16.mxu1 %v6444_v0 }
 0x68f   :  { %5023 = vmatpush1.bf16.msra.mxu0 %v6156_v58  ;;  %5051 = vmatpush3.bf16.msra.mxu1 %v6158_v61 }
 0x690   :  { %5025 = vmatprep.subr.bf16.mxu0 %v6162_v1  ;;  %5052 = vmatprep.subr.bf16.mxu1 %v6444_v0 }
 0x693   :  { %5027 = vmatpush1.bf16.msra.mxu0 %v6166_v52  ;;  %5054 = vmatpush3.bf16.msra.mxu1 %v6168_v63 }
 0x694   :  { %5029 = vmatprep.subr.bf16.mxu0 %v6177_v31  ;;  %5055 = vmatprep.subr.bf16.mxu1 %v6444_v0 }
 0x697   :  { %5031 = vmatpush1.bf16.msra.mxu0 %v6179_v46  ;;  %5057 = vmatpush3.bf16.msra.mxu1 %v6182_v50 }
 0x698   :  { %5033 = vmatprep.subr.bf16.mxu0 %v6186_v42  ;;  %5058 = vmatprep.subr.bf16.mxu1 %v6444_v0 }
 0x69b   :  { %5035 = vmatpush1.bf16.msra.mxu0 %v6189_v2  ;;  %5060 = vmatpush3.bf16.msra.mxu1 %v6192_v43 }
 0x69c   :  { %5037 = vmatprep.subr.bf16.mxu0 %v6196_v23  ;;  %5061 = vmatprep.subr.bf16.mxu1 %v6444_v0 }
 0x69f   :  { %5039 = vmatpush1.bf16.msra.mxu0 %v6199_v55  ;;  %5063 = vmatpush3.bf16.msra.mxu1 %v6202_v21 }
 0x6a0   :  { %5065 = vmatprep.subr.bf16.mxu0 %v6206_v10  ;;  %5096 = vmatprep.subr.bf16.mxu1 %v6444_v0 }
 0x6a2   :  { %3388 = vmatmul.mubr.msk.f32.vlgmr.msra.gmra.mrb[14].mxu0 %vm2914_vm8, %v6435_v15  ;;  %4187 = vmatmul.mubr.msk.f32.vlgmr.msra.gmra.mrb[28].mxu1 %vm2914_vm8, %v6435_v15  ;;  %v6466_v15 = vld [vmem:[#allocation17_spill] sm:$0xff] }
 0x6a3   :  { %5067 = vmatpush1.bf16.msra.mxu0 %v6209_v18  ;;  %5098 = vmatpush3.bf16.msra.mxu1 %v6213_v33 }
 0x6a4   :  { %5069 = vmatprep.subr.bf16.mxu0 %v6219_v34  ;;  %5099 = vmatprep.subr.bf16.mxu1 %v6444_v0 }
 0x6a5   :  { %3218 = vmatprep.mubr.f32.mxu0 %v6434_v38  ;;  %4221 = vmatprep.mubr.msk.f32.mxu1 %vm5357_vm0, %v6434_v38  ;;  %v6465_v38 = vld [vmem:[#allocation16_spill] sm:$0xff] }
 0x6a7   :  { %5071 = vmatpush1.bf16.msra.mxu0 %v6222_v56  ;;  %5101 = vmatpush3.bf16.msra.mxu1 %v6226_v22 }
 0x6a8   :  { %5073 = vmatprep.subr.bf16.mxu0 %v6232_v59  ;;  %5102 = vmatprep.subr.bf16.mxu1 %v6444_v0 }
 0x6ab   :  { %5075 = vmatpush1.bf16.msra.mxu0 %v6235_v60  ;;  %5104 = vmatpush3.bf16.msra.mxu1 %v6238_v53 }
 0x6ac   :  { %5077 = vmatprep.subr.bf16.mxu0 %v6242_v8  ;;  %5105 = vmatprep.subr.bf16.mxu1 %v6444_v0 }
 0x6af   :  { %5079 = vmatpush1.bf16.msra.mxu0 %v6245_v41  ;;  %5107 = vmatpush3.bf16.msra.mxu1 %v6248_v5 }
 0x6b0   :  { %5081 = vmatprep.subr.bf16.mxu0 %v6252_v19  ;;  %5108 = vmatprep.subr.bf16.mxu1 %v6444_v0 }
 0x6b3   :  { %5083 = vmatpush1.bf16.msra.mxu0 %v6255_v27  ;;  %5110 = vmatpush3.bf16.msra.mxu1 %v6258_v3 }
 0x6b4   :  { %5085 = vmatprep.subr.bf16.mxu0 %v6262_v57  ;;  %5111 = vmatprep.subr.bf16.mxu1 %v6444_v0 }
 0x6b7   :  { %5087 = vmatpush1.bf16.msra.mxu0 %v6265_v62  ;;  %5113 = vmatpush3.bf16.msra.mxu1 %v6267_v39 }
 0x6b8   :  { %5089 = vmatprep.subr.bf16.mxu0 %v6464_v11  ;;  %5114 = vmatprep.subr.bf16.mxu1 %v6444_v0 }
 0x6bb   :  { %5091 = vmatpush1.bf16.msra.mxu0 %v6465_v38  ;;  %5116 = vmatpush3.bf16.msra.mxu1 %v6466_v15 }
 0x6bc   :  { %5093 = vmatprep.subr.bf16.mxu0 %v6467_v32  ;;  %5117 = vmatprep.subr.bf16.mxu1 %v6444_v0 }
 0x6bf   :  { %5095 = vmatpush1.bf16.msra.mxu0 %v6468_v48  ;;  %5119 = vmatpush3.bf16.msra.mxu1 %v6469_v54 }
 0x755   :  { %v2813_v44 = vpop.f32.mrb[12].mxu0  ;;  %v2884_v13 = vpop.f32.mrb[26].mxu1 }
 0x756   :  { %v3385_v26 = vmul.f32 -1.442695, %v2813_v44  ;;  %v2815_v4 = vpop.f32.mrb[13].mxu0  ;;  %v4153_v58 = vpop.f32.mrb[27].mxu1  ;;  %v2902_v31 = vadd.f32 %v6116_v40, %v2884_v13 }
 0x757   :  { %v3386_v61 = vmul.f32 -1.442695, %v2815_v4 }
 0x758   :  { %5209 = vpow2.f32 %v3385_v26 }
 0x759   :  { %5211 = vpow2.f32 %v3386_v61 }
 0x762   :  { %v5210_v1 = vpop.eup %5209 }
 0x763   :  { %v2892_v52 = vadd.f32 1.0, %v5210_v1  ;;  %v5212_v63 = vpop.eup %5211 }
 0x764   :  { %v2899_v14 = vadd.f32 1.0, %v5212_v63 }
 0x765   :  { %5213 = vrcp.f32 %v2892_v52 }
 0x766   :  { %5215 = vrcp.f32 %v2899_v14 }
 0x76f   :  { %v5214_v0 = vpop.eup %5213 }
 0x770   :  { %v2903_v46 = vmul.f32 %v5214_v0, %v2902_v31  ;;  %v5216_v42 = vpop.eup %5215 }
 0x771   :  { %v2906_v2 = vsub.f32 1.0, %v5216_v42  ;;  %v2908_v55 = vmul.f32 %v5216_v42, %v6297_v35 }
 0x772   :  { %v2904_v50 = vadd.f32 %v2903_v46, %v2695_v28 }
 0x774   :  { %5217 = vtanh.f32 %v2904_v50 }
 0x775   :  { %v3102_v10 = vpop.f32.mrb[28].mxu1 }
 0x776   :  { %v4188_v18 = vpop.f32.mrb[29].mxu1 }
 0x77e   :  { %v5218_v43 = vpop.eup %5217 }
 0x77f   :  { %v2907_v23 = vmul.f32 %v5218_v43, %v2906_v2 }
 0x781   :  { %v2909_v21 = vadd.f32 %v2908_v55, %v2907_v23 }
 0x783   :  { %2911 = vst [vmem:[#allocation8 + $0x30] sm:$0xff] %v2909_v21  ;;  %3219 = vmatmul.mubr.f32.vlgmr.msra.gmra.mrb[14].mxu0 %v2909_v21  ;;  %4222 = vmatmul.mubr.f32.vlgmr.msra.gmra.mrb[30].mxu1 %v2909_v21 }
 0x856   :  { %v3220_v33 = vpop.f32.mrb[14].mxu0  ;;  %v3291_v34 = vpop.f32.mrb[30].mxu1 }
 0x857   :  { %v3390_v56 = vmul.f32 -1.442695, %v3220_v33  ;;  %v3222_v22 = vpop.f32.mrb[15].mxu0  ;;  %v4223_v59 = vpop.f32.mrb[31].mxu1  ;;  %v3309_v19 = vadd.f32 %v6116_v40, %v3291_v34 }
 0x858   :  { %v3391_v60 = vmul.f32 -1.442695, %v3222_v22 }
 0x859   :  { %5219 = vpow2.f32 %v3390_v56 }
 0x85a   :  { %5221 = vpow2.f32 %v3391_v60 }
 0x863   :  { %v5220_v53 = vpop.eup %5219 }
 0x864   :  { %v3299_v8 = vadd.f32 1.0, %v5220_v53  ;;  %v5222_v41 = vpop.eup %5221 }
 0x865   :  { %v3306_v5 = vadd.f32 1.0, %v5222_v41 }
 0x866   :  { %5223 = vrcp.f32 %v3299_v8 }
 0x867   :  { %5225 = vrcp.f32 %v3306_v5 }
 0x870   :  { %v5224_v27 = vpop.eup %5223 }
 0x871   :  { %v3310_v3 = vmul.f32 %v5224_v27, %v3309_v19  ;;  %v5226_v62 = vpop.eup %5225 }
 0x872   :  { %v3313_v39 = vsub.f32 1.0, %v5226_v62  ;;  %v3315_v29 = vmul.f32 %v5226_v62, %v2909_v21 }
 0x873   :  { %v3311_v57 = vadd.f32 %v3310_v3, %v3102_v10 }
 0x875   :  { %5227 = vtanh.f32 %v3311_v57 }
 0x87f   :  { %v5228_v7 = vpop.eup %5227 }
 0x880   :  { %v3314_v12 = vmul.f32 %v5228_v7, %v3313_v39 }
 0x882   :  { %v3316_v49 = vadd.f32 %v3315_v29, %v3314_v12 }
 0x884   :  { %3318 = vst [vmem:[#allocation8 + $0x38] sm:$0xff] %v3316_v49  ;;  %3319 = vst [vmem:[#allocation9] sm:$0xff] %v3316_v49 }
 0x885   :  { %5307 = shalt.err (!%p5304_p0)
}
 0x886   :  { %s5308_s15 = scalar_lea.hbm %s6407_s4, 1024 }
 0x887   :  { %p5309_p1 = scmp.ne.s32.totalorder %s6407_s4, %s5308_s15  ;;  %p5312_p2 = scmp.lt.u32.totalorder %s5308_s15, %s6407_s4 }
 0x889   :  { %p5314_p3 = pnand %p5312_p2, %p5309_p1 }
 0x88b   :  { %5317 = shalt.err (!%p5314_p3)
}
 0x88c   :  { %3331 = dma.vmem_to_hbm [thread:$0]  %s3326_s9, 1024, %s6407_s4, [#allocation4], %s5352_s1, %s5352_s1, %s5353_s17  }
 0x88d   :  { %s5318_s23 = scalar_lea.vmem %s3339_s11, 128  ;;  %p5323_p5 = scmp.lt.s32.totalorder %s3339_s11, %s3339_s11 }
 0x88e   :  { %p5319_p4 = scmp.ne.s32.totalorder %s3339_s11, %s5318_s23  ;;  %p5324_p6 = scmp.lt.s32.totalorder %s5318_s23, %s5318_s23 }
 0x890   :  { %p5325_p7 = por %p5324_p6, %p5323_p5 }
 0x892   :  { %p5326_p8 = pnand %p5325_p7, %p5319_p4 }
 0x894   :  { %5329 = shalt.err (!%p5326_p8)
}
 0x895   :  { %s5330_s26 = scalar_lea.hbm %s6408_s5, 128 }
 0x896   :  { %p5331_p9 = scmp.ne.s32.totalorder %s6408_s5, %s5330_s26  ;;  %p5334_p10 = scmp.lt.u32.totalorder %s5330_s26, %s6408_s5 }
 0x898   :  { %p5336_p11 = pnand %p5334_p10, %p5331_p9 }
 0x89a   :  { %5339 = shalt.err (!%p5336_p11)
}
 0x89b   :  { %3341 = dma.vmem_to_hbm [thread:$0]  %s3339_s11, 128, %s6408_s5, [#allocation10]  }
 0x89c   :  { %5344 = dma.done.wait [#allocation4], 1024  }
 0x89d   :  { %5345 = vsyncadd [#allocation4], 4294966272 }
 0x89e   :  { %5346 = dma.done.wait [#allocation10], 128  }
 0x89f   :  { %5347 = vsyncadd [#allocation10], 4294967168 }
 0x8a0   :  { %3348 = vsyncpa [#allocation3], 1 }
 0x8a1   :  { %3349 = vsyncpa [#allocation6], 1 }
 0x8a2   :  { %3350 = vsyncpa [#allocation4], 1 }
 0x8a3   :  { %3351 = vsyncpa [#allocation10], 1 }

</bundles_post_ra>
